<compile_context>
chip_gen: v6e
topology: v6e:2x2x1
jax: 0.10.0
libtpu: 0.0.40
codegen_flags: <defaults>
</compile_context>

<pallas_src>
import functools
import math

import jax
import jax.numpy as jnp
from jax.experimental import pallas as pl
from jax.experimental.pallas import tpu as pltpu

_MASK_VALUE = -1e30   # finite "minus infinity" for the additive attention mask
_LN_EPS = 1e-5        # torch.nn.LayerNorm default


def _layernorm(x, gamma, beta, eps=_LN_EPS):
    mean = jnp.mean(x, axis=-1, keepdims=True)
    var = jnp.mean((x - mean) ** 2, axis=-1, keepdims=True)
    return (x - mean) * jax.lax.rsqrt(var + eps) * gamma + beta


def transformer_stack_kernel(
    x_ref, mask_ref,
    qw_ref, kw_ref, vw_ref, qb_ref, kb_ref, vb_ref,
    ow_ref, ob_ref,
    ln1g_ref, ln1b_ref,
    ff1w_ref, ff1b_ref, ff2w_ref, ff2b_ref,
    ln2g_ref, ln2b_ref,
    o_ref,
    bias_scratch,
    *, num_heads, compute_dtype,
):
    l = pl.program_id(1)
    Bt, S, D = x_ref.shape
    H = num_heads
    hd = D // H

    # ---- once per batch block: seed resident activation + build causal/padding bias ----
    @pl.when(l == 0)
    def _init():
        o_ref[...] = x_ref[...]
        row = jax.lax.broadcasted_iota(jnp.int32, (S, S), 0)
        col = jax.lax.broadcasted_iota(jnp.int32, (S, S), 1)
        causal = row >= col
        for bi in range(Bt):
            pad = mask_ref[bi, 0, :] > 0.0                       # (S,) keys to keep
            keep = jnp.logical_and(causal, pad[None, :])
            bias_scratch[bi] = jnp.where(keep, 0.0, _MASK_VALUE)  # (S, S)

    # ---- this layer's weights (loaded once, reused for every batch element in the block) ----
    qw = qw_ref[0].astype(compute_dtype)     # (D, D), 1/sqrt(hd) pre-folded
    kw = kw_ref[0].astype(compute_dtype)
    vw = vw_ref[0].astype(compute_dtype)
    qb = qb_ref[0, 0]                        # (D,) f32, scale pre-folded
    kb = kb_ref[0, 0]
    vb = vb_ref[0, 0]
    ow = ow_ref[0].astype(compute_dtype)     # (H, hd, D)
    ob = ob_ref[0, 0]
    ln1g, ln1b = ln1g_ref[0, 0], ln1b_ref[0, 0]
    ff1w = ff1w_ref[0].astype(compute_dtype)
    ff1b = ff1b_ref[0, 0]
    ff2w = ff2w_ref[0].astype(compute_dtype)
    ff2b = ff2b_ref[0, 0]
    ln2g, ln2b = ln2g_ref[0, 0], ln2b_ref[0, 0]

    # Static unroll over the folded batch chunk (Bt is small by construction).
    for bi in range(Bt):
        x = o_ref[bi]                        # (S, D) current activation, f32
        xc = x.astype(compute_dtype)

        # fused-per-matrix QKV projections, head-major layout (S, H, hd); no (S,3D) intermediate
        q = (jnp.dot(xc, qw, preferred_element_type=jnp.float32) + qb).reshape(S, H, hd)
        k = (jnp.dot(xc, kw, preferred_element_type=jnp.float32) + kb).reshape(S, H, hd)
        v = (jnp.dot(xc, vw, preferred_element_type=jnp.float32) + vb).reshape(S, H, hd)
        q = jnp.transpose(q, (1, 0, 2)).astype(compute_dtype)    # (H, S, hd)
        k = jnp.transpose(k, (1, 0, 2)).astype(compute_dtype)
        v = jnp.transpose(v, (1, 0, 2)).astype(compute_dtype)

        # head-batched attention: one dot_general per matmul, no per-head loop
        scores = jax.lax.dot_general(q, k, (((2,), (2,)), ((0,), (0,))),
                                     preferred_element_type=jnp.float32)       # (H, S, S)
        scores = scores + bias_scratch[bi][None, :, :]
        m = jnp.max(scores, axis=-1, keepdims=True)
        p = jnp.exp(scores - m)
        denom = jnp.sum(p, axis=-1, keepdims=True)
        w = p * pl.reciprocal(denom, approx=True)                               # softmax weights

        ctx = jax.lax.dot_general(w.astype(compute_dtype), v,
                                  (((2,), (1,)), ((0,), (0,))),
                                  preferred_element_type=jnp.float32)           # (H, S, hd)

        # output projection without transpose(ctx).reshape(S, D): head-batched matmul + sum over H
        attn_heads = jax.lax.dot_general(ctx.astype(compute_dtype), ow,
                                         (((2,), (1,)), ((0,), (0,))),
                                         preferred_element_type=jnp.float32)    # (H, S, D)
        attn_out = jnp.sum(attn_heads, axis=0) + ob                             # (S, D)

        # residual + LayerNorm (dropout = identity in eval)
        h1 = _layernorm(x + attn_out, ln1g, ln1b)

        # position-wise feed forward
        ff_h = jnp.maximum(
            jnp.dot(h1.astype(compute_dtype), ff1w, preferred_element_type=jnp.float32) + ff1b,
            0.0)
        ff_o = jnp.dot(ff_h.astype(compute_dtype), ff2w,
                       preferred_element_type=jnp.float32) + ff2b

        o_ref[bi] = _layernorm(h1 + ff_o, ln2g, ln2b)


def _device_vmem_bytes(default=64 << 20):
    try:
        info = pltpu.get_tpu_info()
        return int(getattr(info, "vmem_capacity_bytes", default))
    except Exception:  # pragma: no cover - conservative fallback
        return default


def transformer_stack_forward(x, attention_mask, stacked_params, num_heads,
                              compute_dtype=jnp.bfloat16, batch_block=None):
    """x: (B,S,D) f32, attention_mask: (B,S) 1=keep/0=pad, stacked_params: dict of [L,...] arrays
    produced by stack_and_prepare_params."""
    B, S, D = x.shape
    L = stacked_params["q_w"].shape[0]
    F_dim = stacked_params["ff1_w"].shape[2]
    H = num_heads
    hd = D // H

    if batch_block is None:
        # Fold batch into the block to avoid re-streaming every layer's weights once per batch
        # element, but keep >= 2 steps on the leading "parallel" axis (v7x megacore) and bound
        # the static unroll.
        batch_block = B if B < 2 else max(1, B // 2)
        batch_block = min(batch_block, 8)
    while B % batch_block:
        batch_block -= 1
    Bt = batch_block
    nb = B // Bt

    mask3 = attention_mask.astype(jnp.float32).reshape(B, 1, S)

    def wspec(shape):   # one layer's weight block, indexed only by the layer grid axis
        nd = len(shape)
        return pl.BlockSpec((1,) + shape, lambda bb, l, _n=nd: (l,) + (0,) * _n)

    in_specs = [
        pl.BlockSpec((Bt, S, D), lambda bb, l: (bb, 0, 0)),      # x (read at l == 0 only)
        pl.BlockSpec((Bt, 1, S), lambda bb, l: (bb, 0, 0)),      # padding mask
        wspec((D, D)), wspec((D, D)), wspec((D, D)),             # q_w, k_w, v_w (head-major)
        wspec((1, D)), wspec((1, D)), wspec((1, D)),             # q_b, k_b, v_b
        wspec((H, hd, D)), wspec((1, D)),                        # out_w (H,hd,D), out_b
        wspec((1, D)), wspec((1, D)),                            # ln1 gamma, beta
        wspec((D, F_dim)), wspec((1, F_dim)),                    # ff1_w, ff1_b
        wspec((F_dim, D)), wspec((1, D)),                        # ff2_w, ff2_b
        wspec((1, D)), wspec((1, D)),                            # ln2 gamma, beta
    ]

    kernel = functools.partial(transformer_stack_kernel,
                               num_heads=num_heads, compute_dtype=compute_dtype)

    weight_keys = ["q_w", "k_w", "v_w", "q_b", "k_b", "v_b", "out_w", "out_b",
                   "ln1_g", "ln1_b", "ff1_w", "ff1_b", "ff2_w", "ff2_b", "ln2_g", "ln2_b"]
    weight_args = [stacked_params[k] for k in weight_keys]

    # Chip-aware VMEM budget: per-layer weight blocks + activation blocks, x2 double buffering,
    # plus the bias scratch; capped below the device capacity (v7x has only 64 MiB per TC).
    per_layer_weight_bytes = sum(math.prod(a.shape[1:]) * a.dtype.itemsize for a in weight_args)
    act_block_bytes = 4 * (2 * Bt * S * D + Bt * S)
    vmem_needed = 2 * (per_layer_weight_bytes + act_block_bytes) + 4 * Bt * S * S + (4 << 20)
    vmem_cap = _device_vmem_bytes()
    vmem_limit = int(min(vmem_cap - (8 << 20), max(32 << 20, vmem_needed)))

    return pl.pallas_call(
        kernel,
        out_shape=jax.ShapeDtypeStruct((B, S, D), jnp.float32),
        grid_spec=pltpu.PrefetchScalarGridSpec(
            num_scalar_prefetch=0,
            grid=(nb, L),                                  # L innermost: activation stays resident
            in_specs=in_specs,
            out_specs=pl.BlockSpec((Bt, S, D), lambda bb, l: (bb, 0, 0)),
            scratch_shapes=[pltpu.VMEM((Bt, S, S), jnp.float32)],   # causal+padding bias
        ),
        compiler_params=pltpu.CompilerParams(
            dimension_semantics=("parallel", "arbitrary"),
            vmem_limit_bytes=vmem_limit,
        ),
    )(x, mask3, *weight_args)


def stack_and_prepare_params(layer_params, num_heads):
    """Stack per-layer params into [L, ...] arrays, split PyTorch's per-head-interleaved
    [q_h|k_h|v_h] QKV layout into separate head-major Q/K/V matrices, fold 1/sqrt(head_dim)
    into the Q weight/bias, and reshape out_w to (H, hd, D)."""
    D = layer_params[0]["qkv_w"].shape[0]
    hd = D // num_heads
    scale = 1.0 / math.sqrt(hd)

    heads = jnp.arange(D) // hd
    j = jnp.arange(D) % hd

    def cols(which):                      # columns of the interleaved layout for Q/K/V, head-major
        return heads * 3 * hd + which * hd + j

    def stackw(which):
        return jnp.stack([p["qkv_w"][:, cols(which)] for p in layer_params], axis=0)

    def stackb(which):
        return jnp.stack([p["qkv_b"][:, cols(which)] for p in layer_params], axis=0)

    def stack(key):
        return jnp.stack([p[key] for p in layer_params], axis=0)

    return {
        "q_w": stackw(0) * scale, "k_w": stackw(1), "v_w": stackw(2),
        "q_b": stackb(0) * scale, "k_b": stackb(1), "v_b": stackb(2),
        "out_w": jnp.stack([p["out_w"].reshape(num_heads, hd, D) for p in layer_params], axis=0),
        "out_b": stack("out_b"),
        "ln1_g": stack("ln1_g"), "ln1_b": stack("ln1_b"),
        "ff1_w": stack("ff1_w"), "ff1_b": stack("ff1_b"),
        "ff2_w": stack("ff2_w"), "ff2_b": stack("ff2_b"),
        "ln2_g": stack("ln2_g"), "ln2_b": stack("ln2_b"),
    }


def init_layer_params(key, d_model, dim_feedforward):
    ks = jax.random.split(key, 8)
    s = 0.02
    return {
        "qkv_w": s * jax.random.normal(ks[0], (d_model, 3 * d_model), jnp.float32),
        "qkv_b": s * jax.random.normal(ks[1], (1, 3 * d_model), jnp.float32),
        "out_w": s * jax.random.normal(ks[2], (d_model, d_model), jnp.float32),
        "out_b": s * jax.random.normal(ks[3], (1, d_model), jnp.float32),
        "ln1_g": jnp.ones((1, d_model), jnp.float32),
        "ln1_b": jnp.zeros((1, d_model), jnp.float32),
        "ff1_w": s * jax.random.normal(ks[4], (d_model, dim_feedforward), jnp.float32),
        "ff1_b": s * jax.random.normal(ks[5], (1, dim_feedforward), jnp.float32),
        "ff2_w": s * jax.random.normal(ks[6], (dim_feedforward, d_model), jnp.float32),
        "ff2_b": s * jax.random.normal(ks[7], (1, d_model), jnp.float32),
        "ln2_g": jnp.ones((1, d_model), jnp.float32),
        "ln2_b": jnp.zeros((1, d_model), jnp.float32),
    }


def reference_forward(x, attention_mask, layer_params, num_heads):
    """Pure-JAX mirror of the PyTorch module (original per-head-interleaved QKV layout)."""
    B, S, D = x.shape
    hd = D // num_heads
    causal = jnp.tril(jnp.ones((S, S), dtype=bool))
    pad = attention_mask.astype(bool)[:, None, None, :]
    keep = causal[None, None, :, :] & pad
    for p in layer_params:
        qkv = x @ p["qkv_w"] + p["qkv_b"]
        qkv = qkv.reshape(B, S, num_heads, 3 * hd).transpose(0, 2, 1, 3)
        q, k, v = jnp.split(qkv, 3, axis=-1)
        scores = (q @ jnp.swapaxes(k, -1, -2)) / math.sqrt(hd)
        scores = jnp.where(keep, scores, _MASK_VALUE)
        w = jax.nn.softmax(scores, axis=-1)
        vals = (w @ v).transpose(0, 2, 1, 3).reshape(B, S, D)
        attn = vals @ p["out_w"] + p["out_b"]
        x = _layernorm(x + attn, p["ln1_g"][0], p["ln1_b"][0])
        ffh = jax.nn.relu(x @ p["ff1_w"] + p["ff1_b"])
        ffo = ffh @ p["ff2_w"] + p["ff2_b"]
        x = _layernorm(x + ffo, p["ln2_g"][0], p["ln2_b"][0])
    return x


if __name__ == "__main__":
    num_layers = 2
    d_model = 64
    nhead = 4
    dim_feedforward = 128
    batch = 2
    seq = 16

    key = jax.random.PRNGKey(0)
    kx, *kl = jax.random.split(key, num_layers + 1)

    x = jax.random.normal(kx, (batch, seq, d_model), jnp.float32)
    # attention_mask: 1 = keep, 0 = pad (pad the last 3 tokens of batch element 1)
    attention_mask = jnp.ones((batch, seq), jnp.float32)
    attention_mask = attention_mask.at[1, -3:].set(0.0)

    layer_params = [init_layer_params(kl[i], d_model, dim_feedforward) for i in range(num_layers)]
    stacked = stack_and_prepare_params(layer_params, nhead)
    ref = reference_forward(x, attention_mask, layer_params, nhead)

    # f32 MXU operands: tight parity with the PyTorch/JAX reference.
    out_f32 = transformer_stack_forward(x, attention_mask, stacked, nhead,
                                        compute_dtype=jnp.float32)
    out_f32 = jax.block_until_ready(out_f32)
    assert out_f32.shape == (batch, seq, d_model)
    assert bool(jnp.all(jnp.isfinite(out_f32)))
    assert bool(jnp.allclose(out_f32, ref, atol=2e-2, rtol=2e-2))

    # bf16 MXU operands (production default; f32 accumulate): looser tolerance.
    out_bf16 = transformer_stack_forward(x, attention_mask, stacked, nhead)
    out_bf16 = jax.block_until_ready(out_bf16)
    assert bool(jnp.all(jnp.isfinite(out_bf16)))
    assert bool(jnp.allclose(out_bf16, ref, atol=5e-2, rtol=5e-2))

    print("KERNEL_OK")
</pallas_src>

<mosaic_0001>
module attributes {stable_mosaic.version = 11 : i64} {
  func.func @transformer_stack_kernel(%arg0: i32, %arg1: i32, %arg2: memref<1x16x64xf32, #tpu.memory_space<vmem>>, %arg3: memref<1x1x16xf32, #tpu.memory_space<vmem>>, %arg4: memref<1x64x64xf32, #tpu.memory_space<vmem>>, %arg5: memref<1x64x64xf32, #tpu.memory_space<vmem>>, %arg6: memref<1x64x64xf32, #tpu.memory_space<vmem>>, %arg7: memref<1x1x64xf32, #tpu.memory_space<vmem>>, %arg8: memref<1x1x64xf32, #tpu.memory_space<vmem>>, %arg9: memref<1x1x64xf32, #tpu.memory_space<vmem>>, %arg10: memref<1x4x16x64xf32, #tpu.memory_space<vmem>>, %arg11: memref<1x1x64xf32, #tpu.memory_space<vmem>>, %arg12: memref<1x1x64xf32, #tpu.memory_space<vmem>>, %arg13: memref<1x1x64xf32, #tpu.memory_space<vmem>>, %arg14: memref<1x64x128xf32, #tpu.memory_space<vmem>>, %arg15: memref<1x1x128xf32, #tpu.memory_space<vmem>>, %arg16: memref<1x128x64xf32, #tpu.memory_space<vmem>>, %arg17: memref<1x1x64xf32, #tpu.memory_space<vmem>>, %arg18: memref<1x1x64xf32, #tpu.memory_space<vmem>>, %arg19: memref<1x1x64xf32, #tpu.memory_space<vmem>>, %arg20: memref<1x16x64xf32, #tpu.memory_space<vmem>>, %arg21: memref<1x16x16xf32, #tpu.memory_space<vmem>>) attributes {dimension_semantics = [#tpu.dimension_semantics<parallel>, #tpu.dimension_semantics<arbitrary>], iteration_bounds = array<i64: 2, 2>, scalar_prefetch = 0 : i64, scratch_operands = 1 : i64, tpu.core_type = #tpu.core_type<tc>, window_params = [{transform_indices = @transform_0, window_bounds = array<i64: 1, 16, 64>}, {transform_indices = @transform_1, window_bounds = array<i64: 1, 1, 16>}, {transform_indices = @transform_2, window_bounds = array<i64: 1, 64, 64>}, {transform_indices = @transform_3, window_bounds = array<i64: 1, 64, 64>}, {transform_indices = @transform_4, window_bounds = array<i64: 1, 64, 64>}, {transform_indices = @transform_5, window_bounds = array<i64: 1, 1, 64>}, {transform_indices = @transform_6, window_bounds = array<i64: 1, 1, 64>}, {transform_indices = @transform_7, window_bounds = array<i64: 1, 1, 64>}, {transform_indices = @transform_8, window_bounds = array<i64: 1, 4, 16, 64>}, {transform_indices = @transform_9, window_bounds = array<i64: 1, 1, 64>}, {transform_indices = @transform_10, window_bounds = array<i64: 1, 1, 64>}, {transform_indices = @transform_11, window_bounds = array<i64: 1, 1, 64>}, {transform_indices = @transform_12, window_bounds = array<i64: 1, 64, 128>}, {transform_indices = @transform_13, window_bounds = array<i64: 1, 1, 128>}, {transform_indices = @transform_14, window_bounds = array<i64: 1, 128, 64>}, {transform_indices = @transform_15, window_bounds = array<i64: 1, 1, 64>}, {transform_indices = @transform_16, window_bounds = array<i64: 1, 1, 64>}, {transform_indices = @transform_17, window_bounds = array<i64: 1, 1, 64>}, {transform_indices = @transform_18, window_bounds = array<i64: 1, 16, 64>}]} {
    %c0_i32 = arith.constant 0 : i32
    %0 = arith.cmpi eq, %arg1, %c0_i32 : i32
    %1 = arith.extui %0 : i1 to i32
    %c0_i32_0 = arith.constant 0 : i32
    %2 = arith.cmpi ne, %1, %c0_i32_0 : i32
    scf.if %2 {
      %c0_79 = arith.constant 0 : index
      %c0_80 = arith.constant 0 : index
      %c0_81 = arith.constant 0 : index
      %140 = vector.load %arg2[%c0_79, %c0_80, %c0_81] : memref<1x16x64xf32, #tpu.memory_space<vmem>>, vector<1x16x64xf32>
      %c0_82 = arith.constant 0 : index
      %c0_83 = arith.constant 0 : index
      %c0_84 = arith.constant 0 : index
      %141 = vector.load %arg20[%c0_82, %c0_83, %c0_84] : memref<1x16x64xf32, #tpu.memory_space<vmem>>, vector<1x16x64xf32>
      tpu.vector_store %arg20[%c0_82, %c0_83, %c0_84], %140 {strides = array<i32>} : memref<1x16x64xf32, #tpu.memory_space<vmem>>, vector<1x16x64xf32>,
      %142 = tpu.iota {dimensions = array<i32: 0>} : vector<16x16xi32>
      %143 = tpu.iota {dimensions = array<i32: 1>} : vector<16x16xi32>
      %144 = arith.cmpi sge, %142, %143 : vector<16x16xi32>
      %c0_85 = arith.constant 0 : index
      %c0_86 = arith.constant 0 : index
      %c0_87 = arith.constant 0 : index
      %145 = vector.load %arg3[%c0_85, %c0_86, %c0_87] : memref<1x1x16xf32, #tpu.memory_space<vmem>>, vector<1x1x16xf32>
      %146 = vector.shape_cast %145 : vector<1x1x16xf32> to vector<16xf32>
      %cst_88 = arith.constant 0.000000e+00 : f32
      %147 = vector.broadcast %cst_88 : f32 to vector<16xf32>
      %148 = arith.cmpf ogt, %146, %147 : vector<16xf32>
      %149 = vector.shape_cast %148 : vector<16xi1> to vector<1x16xi1>
      %150 = vector.broadcast %149 : vector<1x16xi1> to vector<16x16xi1>
      %151 = arith.andi %144, %150 : vector<16x16xi1>
      %cst_89 = arith.constant 0.000000e+00 : f32
      %cst_90 = arith.constant -1.000000e+30 : f32
      %152 = vector.broadcast %cst_89 : f32 to vector<16x16xf32>
      %153 = vector.broadcast %cst_90 : f32 to vector<16x16xf32>
      %154 = arith.select %151, %152, %153 : vector<16x16xi1>, vector<16x16xf32>
      %c0_91 = arith.constant 0 : index
      %c0_92 = arith.constant 0 : index
      %c0_93 = arith.constant 0 : index
      %155 = vector.load %arg21[%c0_91, %c0_92, %c0_93] : memref<1x16x16xf32, #tpu.memory_space<vmem>>, vector<1x16x16xf32>
      %156 = vector.shape_cast %155 : vector<1x16x16xf32> to vector<16x16xf32>
      %157 = vector.shape_cast %154 : vector<16x16xf32> to vector<1x16x16xf32>
      tpu.vector_store %arg21[%c0_91, %c0_92, %c0_93], %157 {strides = array<i32>} : memref<1x16x16xf32, #tpu.memory_space<vmem>>, vector<1x16x16xf32>,
    } else {
    }
    %c0 = arith.constant 0 : index
    %c0_1 = arith.constant 0 : index
    %c0_2 = arith.constant 0 : index
    %3 = vector.load %arg4[%c0, %c0_1, %c0_2] : memref<1x64x64xf32, #tpu.memory_space<vmem>>, vector<1x64x64xf32>
    %4 = vector.shape_cast %3 : vector<1x64x64xf32> to vector<64x64xf32>
    %c0_3 = arith.constant 0 : index
    %c0_4 = arith.constant 0 : index
    %c0_5 = arith.constant 0 : index
    %5 = vector.load %arg5[%c0_3, %c0_4, %c0_5] : memref<1x64x64xf32, #tpu.memory_space<vmem>>, vector<1x64x64xf32>
    %6 = vector.shape_cast %5 : vector<1x64x64xf32> to vector<64x64xf32>
    %c0_6 = arith.constant 0 : index
    %c0_7 = arith.constant 0 : index
    %c0_8 = arith.constant 0 : index
    %7 = vector.load %arg6[%c0_6, %c0_7, %c0_8] : memref<1x64x64xf32, #tpu.memory_space<vmem>>, vector<1x64x64xf32>
    %8 = vector.shape_cast %7 : vector<1x64x64xf32> to vector<64x64xf32>
    %c0_9 = arith.constant 0 : index
    %c0_10 = arith.constant 0 : index
    %c0_11 = arith.constant 0 : index
    %9 = vector.load %arg7[%c0_9, %c0_10, %c0_11] : memref<1x1x64xf32, #tpu.memory_space<vmem>>, vector<1x1x64xf32>
    %10 = vector.shape_cast %9 : vector<1x1x64xf32> to vector<64xf32>
    %c0_12 = arith.constant 0 : index
    %c0_13 = arith.constant 0 : index
    %c0_14 = arith.constant 0 : index
    %11 = vector.load %arg8[%c0_12, %c0_13, %c0_14] : memref<1x1x64xf32, #tpu.memory_space<vmem>>, vector<1x1x64xf32>
    %12 = vector.shape_cast %11 : vector<1x1x64xf32> to vector<64xf32>
    %c0_15 = arith.constant 0 : index
    %c0_16 = arith.constant 0 : index
    %c0_17 = arith.constant 0 : index
    %13 = vector.load %arg9[%c0_15, %c0_16, %c0_17] : memref<1x1x64xf32, #tpu.memory_space<vmem>>, vector<1x1x64xf32>
    %14 = vector.shape_cast %13 : vector<1x1x64xf32> to vector<64xf32>
    %c0_18 = arith.constant 0 : index
    %c0_19 = arith.constant 0 : index
    %c0_20 = arith.constant 0 : index
    %c0_21 = arith.constant 0 : index
    %15 = vector.load %arg10[%c0_18, %c0_19, %c0_20, %c0_21] : memref<1x4x16x64xf32, #tpu.memory_space<vmem>>, vector<1x4x16x64xf32>
    %16 = vector.shape_cast %15 : vector<1x4x16x64xf32> to vector<4x16x64xf32>
    %c0_22 = arith.constant 0 : index
    %c0_23 = arith.constant 0 : index
    %c0_24 = arith.constant 0 : index
    %17 = vector.load %arg11[%c0_22, %c0_23, %c0_24] : memref<1x1x64xf32, #tpu.memory_space<vmem>>, vector<1x1x64xf32>
    %18 = vector.shape_cast %17 : vector<1x1x64xf32> to vector<64xf32>
    %c0_25 = arith.constant 0 : index
    %c0_26 = arith.constant 0 : index
    %c0_27 = arith.constant 0 : index
    %19 = vector.load %arg12[%c0_25, %c0_26, %c0_27] : memref<1x1x64xf32, #tpu.memory_space<vmem>>, vector<1x1x64xf32>
    %20 = vector.shape_cast %19 : vector<1x1x64xf32> to vector<64xf32>
    %c0_28 = arith.constant 0 : index
    %c0_29 = arith.constant 0 : index
    %c0_30 = arith.constant 0 : index
    %21 = vector.load %arg13[%c0_28, %c0_29, %c0_30] : memref<1x1x64xf32, #tpu.memory_space<vmem>>, vector<1x1x64xf32>
    %22 = vector.shape_cast %21 : vector<1x1x64xf32> to vector<64xf32>
    %c0_31 = arith.constant 0 : index
    %c0_32 = arith.constant 0 : index
    %c0_33 = arith.constant 0 : index
    %23 = vector.load %arg14[%c0_31, %c0_32, %c0_33] : memref<1x64x128xf32, #tpu.memory_space<vmem>>, vector<1x64x128xf32>
    %24 = vector.shape_cast %23 : vector<1x64x128xf32> to vector<64x128xf32>
    %c0_34 = arith.constant 0 : index
    %c0_35 = arith.constant 0 : index
    %c0_36 = arith.constant 0 : index
    %25 = vector.load %arg15[%c0_34, %c0_35, %c0_36] : memref<1x1x128xf32, #tpu.memory_space<vmem>>, vector<1x1x128xf32>
    %26 = vector.shape_cast %25 : vector<1x1x128xf32> to vector<128xf32>
    %c0_37 = arith.constant 0 : index
    %c0_38 = arith.constant 0 : index
    %c0_39 = arith.constant 0 : index
    %27 = vector.load %arg16[%c0_37, %c0_38, %c0_39] : memref<1x128x64xf32, #tpu.memory_space<vmem>>, vector<1x128x64xf32>
    %28 = vector.shape_cast %27 : vector<1x128x64xf32> to vector<128x64xf32>
    %c0_40 = arith.constant 0 : index
    %c0_41 = arith.constant 0 : index
    %c0_42 = arith.constant 0 : index
    %29 = vector.load %arg17[%c0_40, %c0_41, %c0_42] : memref<1x1x64xf32, #tpu.memory_space<vmem>>, vector<1x1x64xf32>
    %30 = vector.shape_cast %29 : vector<1x1x64xf32> to vector<64xf32>
    %c0_43 = arith.constant 0 : index
    %c0_44 = arith.constant 0 : index
    %c0_45 = arith.constant 0 : index
    %31 = vector.load %arg18[%c0_43, %c0_44, %c0_45] : memref<1x1x64xf32, #tpu.memory_space<vmem>>, vector<1x1x64xf32>
    %32 = vector.shape_cast %31 : vector<1x1x64xf32> to vector<64xf32>
    %c0_46 = arith.constant 0 : index
    %c0_47 = arith.constant 0 : index
    %c0_48 = arith.constant 0 : index
    %33 = vector.load %arg19[%c0_46, %c0_47, %c0_48] : memref<1x1x64xf32, #tpu.memory_space<vmem>>, vector<1x1x64xf32>
    %34 = vector.shape_cast %33 : vector<1x1x64xf32> to vector<64xf32>
    %c0_49 = arith.constant 0 : index
    %c0_50 = arith.constant 0 : index
    %c0_51 = arith.constant 0 : index
    %35 = vector.load %arg20[%c0_49, %c0_50, %c0_51] : memref<1x16x64xf32, #tpu.memory_space<vmem>>, vector<1x16x64xf32>
    %36 = vector.shape_cast %35 : vector<1x16x64xf32> to vector<16x64xf32>
    %cst = arith.constant dense<0.000000e+00> : vector<16x64xf32>
    %37 = tpu.matmul %36, %4, %cst {dimension_numbers = #tpu.dot_dimension_numbers<[1], [0], [0], [1], [0, 0, 1, 1], [], []>} : vector<16x64xf32>, vector<64x64xf32>, vector<16x64xf32> -> vector<16x64xf32>
    %38 = vector.shape_cast %10 : vector<64xf32> to vector<1x64xf32>
    %39 = vector.broadcast %38 : vector<1x64xf32> to vector<16x64xf32>
    %40 = arith.addf %37, %39 : vector<16x64xf32>
    %41 = vector.shape_cast %40 : vector<16x64xf32> to vector<16x4x16xf32>
    %cst_52 = arith.constant dense<0.000000e+00> : vector<16x64xf32>
    %42 = tpu.matmul %36, %6, %cst_52 {dimension_numbers = #tpu.dot_dimension_numbers<[1], [0], [0], [1], [0, 0, 1, 1], [], []>} : vector<16x64xf32>, vector<64x64xf32>, vector<16x64xf32> -> vector<16x64xf32>
    %43 = vector.shape_cast %12 : vector<64xf32> to vector<1x64xf32>
    %44 = vector.broadcast %43 : vector<1x64xf32> to vector<16x64xf32>
    %45 = arith.addf %42, %44 : vector<16x64xf32>
    %46 = vector.shape_cast %45 : vector<16x64xf32> to vector<16x4x16xf32>
    %cst_53 = arith.constant dense<0.000000e+00> : vector<16x64xf32>
    %47 = tpu.matmul %36, %8, %cst_53 {dimension_numbers = #tpu.dot_dimension_numbers<[1], [0], [0], [1], [0, 0, 1, 1], [], []>} : vector<16x64xf32>, vector<64x64xf32>, vector<16x64xf32> -> vector<16x64xf32>
    %48 = vector.shape_cast %14 : vector<64xf32> to vector<1x64xf32>
    %49 = vector.broadcast %48 : vector<1x64xf32> to vector<16x64xf32>
    %50 = arith.addf %47, %49 : vector<16x64xf32>
    %51 = vector.shape_cast %50 : vector<16x64xf32> to vector<16x4x16xf32>
    %52 = tpu.transpose %41, [1, 0, 2] : vector<16x4x16xf32> -> vector<4x16x16xf32>
    %53 = tpu.transpose %46, [1, 0, 2] : vector<16x4x16xf32> -> vector<4x16x16xf32>
    %54 = tpu.transpose %51, [1, 0, 2] : vector<16x4x16xf32> -> vector<4x16x16xf32>
    %cst_54 = arith.constant dense<0.000000e+00> : vector<4x16x16xf32>
    %55 = tpu.matmul %52, %53, %cst_54 {dimension_numbers = #tpu.dot_dimension_numbers<[2], [2], [1], [1], [0, 0, 0, 1, 1, 1], [0], [0]>} : vector<4x16x16xf32>, vector<4x16x16xf32>, vector<4x16x16xf32> -> vector<4x16x16xf32>
    %c0_55 = arith.constant 0 : index
    %c0_56 = arith.constant 0 : index
    %c0_57 = arith.constant 0 : index
    %56 = vector.load %arg21[%c0_55, %c0_56, %c0_57] : memref<1x16x16xf32, #tpu.memory_space<vmem>>, vector<1x16x16xf32>
    %57 = vector.shape_cast %56 : vector<1x16x16xf32> to vector<16x16xf32>
    %58 = vector.shape_cast %57 : vector<16x16xf32> to vector<1x16x16xf32>
    %59 = vector.broadcast %58 : vector<1x16x16xf32> to vector<4x16x16xf32>
    %60 = arith.addf %55, %59 : vector<4x16x16xf32>
    %cst_58 = arith.constant dense<0xFF800000> : vector<4x16xf32>
    %61 = vector.multi_reduction <maximumf>, %60, %cst_58 [2] : vector<4x16x16xf32> to vector<4x16xf32>
    %62 = vector.shape_cast %61 : vector<4x16xf32> to vector<4x16x1xf32>
    %63 = vector.broadcast %62 : vector<4x16x1xf32> to vector<4x16x16xf32>
    %64 = arith.subf %60, %63 : vector<4x16x16xf32>
    %65 = math.exp %64 : vector<4x16x16xf32>
    %cst_59 = arith.constant dense<0.000000e+00> : vector<4x16xf32>
    %66 = vector.multi_reduction <add>, %65, %cst_59 [2] : vector<4x16x16xf32> to vector<4x16xf32>
    %67 = vector.shape_cast %66 : vector<4x16xf32> to vector<4x16x1xf32>
    %68 = tpu.reciprocal %67 {approx = true} : vector<4x16x1xf32> -> vector<4x16x1xf32>
    %69 = vector.broadcast %68 : vector<4x16x1xf32> to vector<4x16x16xf32>
    %70 = arith.mulf %65, %69 : vector<4x16x16xf32>
    %cst_60 = arith.constant dense<0.000000e+00> : vector<4x16x16xf32>
    %71 = tpu.matmul %70, %54, %cst_60 {dimension_numbers = #tpu.dot_dimension_numbers<[2], [1], [1], [2], [0, 0, 0, 1, 1, 2], [0], [0]>} : vector<4x16x16xf32>, vector<4x16x16xf32>, vector<4x16x16xf32> -> vector<4x16x16xf32>
    %cst_61 = arith.constant dense<0.000000e+00> : vector<4x16x64xf32>
    %72 = tpu.matmul %71, %16, %cst_61 {dimension_numbers = #tpu.dot_dimension_numbers<[2], [1], [1], [2], [0, 0, 0, 1, 1, 2], [0], [0]>} : vector<4x16x16xf32>, vector<4x16x64xf32>, vector<4x16x64xf32> -> vector<4x16x64xf32>
    %cst_62 = arith.constant dense<0.000000e+00> : vector<16x64xf32>
    %73 = vector.multi_reduction <add>, %72, %cst_62 [0] : vector<4x16x64xf32> to vector<16x64xf32>
    %74 = vector.shape_cast %18 : vector<64xf32> to vector<1x64xf32>
    %75 = vector.broadcast %74 : vector<1x64xf32> to vector<16x64xf32>
    %76 = arith.addf %73, %75 : vector<16x64xf32>
    %77 = arith.addf %36, %76 : vector<16x64xf32>
    %cst_63 = arith.constant dense<0.000000e+00> : vector<16xf32>
    %78 = vector.multi_reduction <add>, %77, %cst_63 [1] : vector<16x64xf32> to vector<16xf32>
    %79 = vector.shape_cast %78 : vector<16xf32> to vector<16x1xf32>
    %cst_64 = arith.constant 6.400000e+01 : f32
    %80 = vector.broadcast %cst_64 : f32 to vector<16x1xf32>
    %81 = arith.divf %79, %80 : vector<16x1xf32>
    %82 = vector.broadcast %81 : vector<16x1xf32> to vector<16x64xf32>
    %83 = arith.subf %77, %82 : vector<16x64xf32>
    %84 = arith.mulf %83, %83 : vector<16x64xf32>
    %cst_65 = arith.constant dense<0.000000e+00> : vector<16xf32>
    %85 = vector.multi_reduction <add>, %84, %cst_65 [1] : vector<16x64xf32> to vector<16xf32>
    %86 = vector.shape_cast %85 : vector<16xf32> to vector<16x1xf32>
    %cst_66 = arith.constant 6.400000e+01 : f32
    %87 = vector.broadcast %cst_66 : f32 to vector<16x1xf32>
    %88 = arith.divf %86, %87 : vector<16x1xf32>
    %89 = vector.broadcast %81 : vector<16x1xf32> to vector<16x64xf32>
    %90 = arith.subf %77, %89 : vector<16x64xf32>
    %cst_67 = arith.constant 9.99999974E-6 : f32
    %91 = vector.broadcast %cst_67 : f32 to vector<16x1xf32>
    %92 = arith.addf %88, %91 : vector<16x1xf32>
    %93 = math.rsqrt %92 : vector<16x1xf32>
    %94 = vector.broadcast %93 : vector<16x1xf32> to vector<16x64xf32>
    %95 = arith.mulf %90, %94 : vector<16x64xf32>
    %96 = vector.shape_cast %20 : vector<64xf32> to vector<1x64xf32>
    %97 = vector.broadcast %96 : vector<1x64xf32> to vector<16x64xf32>
    %98 = arith.mulf %95, %97 : vector<16x64xf32>
    %99 = vector.shape_cast %22 : vector<64xf32> to vector<1x64xf32>
    %100 = vector.broadcast %99 : vector<1x64xf32> to vector<16x64xf32>
    %101 = arith.addf %98, %100 : vector<16x64xf32>
    %cst_68 = arith.constant dense<0.000000e+00> : vector<16x128xf32>
    %102 = tpu.matmul %101, %24, %cst_68 {dimension_numbers = #tpu.dot_dimension_numbers<[1], [0], [0], [1], [0, 0, 1, 1], [], []>} : vector<16x64xf32>, vector<64x128xf32>, vector<16x128xf32> -> vector<16x128xf32>
    %103 = vector.shape_cast %26 : vector<128xf32> to vector<1x128xf32>
    %104 = vector.broadcast %103 : vector<1x128xf32> to vector<16x128xf32>
    %105 = arith.addf %102, %104 : vector<16x128xf32>
    %cst_69 = arith.constant 0.000000e+00 : f32
    %106 = vector.broadcast %cst_69 : f32 to vector<16x128xf32>
    %107 = arith.maximumf %105, %106 : vector<16x128xf32>
    %cst_70 = arith.constant dense<0.000000e+00> : vector<16x64xf32>
    %108 = tpu.matmul %107, %28, %cst_70 {dimension_numbers = #tpu.dot_dimension_numbers<[1], [0], [0], [1], [0, 0, 1, 1], [], []>} : vector<16x128xf32>, vector<128x64xf32>, vector<16x64xf32> -> vector<16x64xf32>
    %109 = vector.shape_cast %30 : vector<64xf32> to vector<1x64xf32>
    %110 = vector.broadcast %109 : vector<1x64xf32> to vector<16x64xf32>
    %111 = arith.addf %108, %110 : vector<16x64xf32>
    %112 = arith.addf %101, %111 : vector<16x64xf32>
    %cst_71 = arith.constant dense<0.000000e+00> : vector<16xf32>
    %113 = vector.multi_reduction <add>, %112, %cst_71 [1] : vector<16x64xf32> to vector<16xf32>
    %114 = vector.shape_cast %113 : vector<16xf32> to vector<16x1xf32>
    %cst_72 = arith.constant 6.400000e+01 : f32
    %115 = vector.broadcast %cst_72 : f32 to vector<16x1xf32>
    %116 = arith.divf %114, %115 : vector<16x1xf32>
    %117 = vector.broadcast %116 : vector<16x1xf32> to vector<16x64xf32>
    %118 = arith.subf %112, %117 : vector<16x64xf32>
    %119 = arith.mulf %118, %118 : vector<16x64xf32>
    %cst_73 = arith.constant dense<0.000000e+00> : vector<16xf32>
    %120 = vector.multi_reduction <add>, %119, %cst_73 [1] : vector<16x64xf32> to vector<16xf32>
    %121 = vector.shape_cast %120 : vector<16xf32> to vector<16x1xf32>
    %cst_74 = arith.constant 6.400000e+01 : f32
    %122 = vector.broadcast %cst_74 : f32 to vector<16x1xf32>
    %123 = arith.divf %121, %122 : vector<16x1xf32>
    %124 = vector.broadcast %116 : vector<16x1xf32> to vector<16x64xf32>
    %125 = arith.subf %112, %124 : vector<16x64xf32>
    %cst_75 = arith.constant 9.99999974E-6 : f32
    %126 = vector.broadcast %cst_75 : f32 to vector<16x1xf32>
    %127 = arith.addf %123, %126 : vector<16x1xf32>
    %128 = math.rsqrt %127 : vector<16x1xf32>
    %129 = vector.broadcast %128 : vector<16x1xf32> to vector<16x64xf32>
    %130 = arith.mulf %125, %129 : vector<16x64xf32>
    %131 = vector.shape_cast %32 : vector<64xf32> to vector<1x64xf32>
    %132 = vector.broadcast %131 : vector<1x64xf32> to vector<16x64xf32>
    %133 = arith.mulf %130, %132 : vector<16x64xf32>
    %134 = vector.shape_cast %34 : vector<64xf32> to vector<1x64xf32>
    %135 = vector.broadcast %134 : vector<1x64xf32> to vector<16x64xf32>
    %136 = arith.addf %133, %135 : vector<16x64xf32>
    %c0_76 = arith.constant 0 : index
    %c0_77 = arith.constant 0 : index
    %c0_78 = arith.constant 0 : index
    %137 = vector.load %arg20[%c0_76, %c0_77, %c0_78] : memref<1x16x64xf32, #tpu.memory_space<vmem>>, vector<1x16x64xf32>
    %138 = vector.shape_cast %137 : vector<1x16x64xf32> to vector<16x64xf32>
    %139 = vector.shape_cast %136 : vector<16x64xf32> to vector<1x16x64xf32>
    tpu.vector_store %arg20[%c0_76, %c0_77, %c0_78], %139 {strides = array<i32>} : memref<1x16x64xf32, #tpu.memory_space<vmem>>, vector<1x16x64xf32>,
    return
  }
  func.func @transform_0(%arg0: i32, %arg1: i32) -> (i32, i32, i32) {
    %c0_i32 = arith.constant 0 : i32
    %c0_i32_0 = arith.constant 0 : i32
    %c0_i32_1 = arith.constant 0 : i32
    return %arg0, %c0_i32, %c0_i32_0 : i32, i32, i32
  }
  func.func @transform_1(%arg0: i32, %arg1: i32) -> (i32, i32, i32) {
    %c0_i32 = arith.constant 0 : i32
    %c0_i32_0 = arith.constant 0 : i32
    %c0_i32_1 = arith.constant 0 : i32
    return %arg0, %c0_i32, %c0_i32_0 : i32, i32, i32
  }
  func.func @transform_2(%arg0: i32, %arg1: i32) -> (i32, i32, i32) {
    %c0_i32 = arith.constant 0 : i32
    %c0_i32_0 = arith.constant 0 : i32
    %c0_i32_1 = arith.constant 0 : i32
    return %arg1, %c0_i32, %c0_i32_0 : i32, i32, i32
  }
  func.func @transform_3(%arg0: i32, %arg1: i32) -> (i32, i32, i32) {
    %c0_i32 = arith.constant 0 : i32
    %c0_i32_0 = arith.constant 0 : i32
    %c0_i32_1 = arith.constant 0 : i32
    return %arg1, %c0_i32, %c0_i32_0 : i32, i32, i32
  }
  func.func @transform_4(%arg0: i32, %arg1: i32) -> (i32, i32, i32) {
    %c0_i32 = arith.constant 0 : i32
    %c0_i32_0 = arith.constant 0 : i32
    %c0_i32_1 = arith.constant 0 : i32
    return %arg1, %c0_i32, %c0_i32_0 : i32, i32, i32
  }
  func.func @transform_5(%arg0: i32, %arg1: i32) -> (i32, i32, i32) {
    %c0_i32 = arith.constant 0 : i32
    %c0_i32_0 = arith.constant 0 : i32
    %c0_i32_1 = arith.constant 0 : i32
    return %arg1, %c0_i32, %c0_i32_0 : i32, i32, i32
  }
  func.func @transform_6(%arg0: i32, %arg1: i32) -> (i32, i32, i32) {
    %c0_i32 = arith.constant 0 : i32
    %c0_i32_0 = arith.constant 0 : i32
    %c0_i32_1 = arith.constant 0 : i32
    return %arg1, %c0_i32, %c0_i32_0 : i32, i32, i32
  }
  func.func @transform_7(%arg0: i32, %arg1: i32) -> (i32, i32, i32) {
    %c0_i32 = arith.constant 0 : i32
    %c0_i32_0 = arith.constant 0 : i32
    %c0_i32_1 = arith.constant 0 : i32
    return %arg1, %c0_i32, %c0_i32_0 : i32, i32, i32
  }
  func.func @transform_8(%arg0: i32, %arg1: i32) -> (i32, i32, i32, i32) {
    %c0_i32 = arith.constant 0 : i32
    %c0_i32_0 = arith.constant 0 : i32
    %c0_i32_1 = arith.constant 0 : i32
    %c0_i32_2 = arith.constant 0 : i32
    return %arg1, %c0_i32, %c0_i32_0, %c0_i32_1 : i32, i32, i32, i32
  }
  func.func @transform_9(%arg0: i32, %arg1: i32) -> (i32, i32, i32) {
    %c0_i32 = arith.constant 0 : i32
    %c0_i32_0 = arith.constant 0 : i32
    %c0_i32_1 = arith.constant 0 : i32
    return %arg1, %c0_i32, %c0_i32_0 : i32, i32, i32
  }
  func.func @transform_10(%arg0: i32, %arg1: i32) -> (i32, i32, i32) {
    %c0_i32 = arith.constant 0 : i32
    %c0_i32_0 = arith.constant 0 : i32
    %c0_i32_1 = arith.constant 0 : i32
    return %arg1, %c0_i32, %c0_i32_0 : i32, i32, i32
  }
  func.func @transform_11(%arg0: i32, %arg1: i32) -> (i32, i32, i32) {
    %c0_i32 = arith.constant 0 : i32
    %c0_i32_0 = arith.constant 0 : i32
    %c0_i32_1 = arith.constant 0 : i32
    return %arg1, %c0_i32, %c0_i32_0 : i32, i32, i32
  }
  func.func @transform_12(%arg0: i32, %arg1: i32) -> (i32, i32, i32) {
    %c0_i32 = arith.constant 0 : i32
    %c0_i32_0 = arith.constant 0 : i32
    %c0_i32_1 = arith.constant 0 : i32
    return %arg1, %c0_i32, %c0_i32_0 : i32, i32, i32
  }
  func.func @transform_13(%arg0: i32, %arg1: i32) -> (i32, i32, i32) {
    %c0_i32 = arith.constant 0 : i32
    %c0_i32_0 = arith.constant 0 : i32
    %c0_i32_1 = arith.constant 0 : i32
    return %arg1, %c0_i32, %c0_i32_0 : i32, i32, i32
  }
  func.func @transform_14(%arg0: i32, %arg1: i32) -> (i32, i32, i32) {
    %c0_i32 = arith.constant 0 : i32
    %c0_i32_0 = arith.constant 0 : i32
    %c0_i32_1 = arith.constant 0 : i32
    return %arg1, %c0_i32, %c0_i32_0 : i32, i32, i32
  }
  func.func @transform_15(%arg0: i32, %arg1: i32) -> (i32, i32, i32) {
    %c0_i32 = arith.constant 0 : i32
    %c0_i32_0 = arith.constant 0 : i32
    %c0_i32_1 = arith.constant 0 : i32
    return %arg1, %c0_i32, %c0_i32_0 : i32, i32, i32
  }
  func.func @transform_16(%arg0: i32, %arg1: i32) -> (i32, i32, i32) {
    %c0_i32 = arith.constant 0 : i32
    %c0_i32_0 = arith.constant 0 : i32
    %c0_i32_1 = arith.constant 0 : i32
    return %arg1, %c0_i32, %c0_i32_0 : i32, i32, i32
  }
  func.func @transform_17(%arg0: i32, %arg1: i32) -> (i32, i32, i32) {
    %c0_i32 = arith.constant 0 : i32
    %c0_i32_0 = arith.constant 0 : i32
    %c0_i32_1 = arith.constant 0 : i32
    return %arg1, %c0_i32, %c0_i32_0 : i32, i32, i32
  }
  func.func @transform_18(%arg0: i32, %arg1: i32) -> (i32, i32, i32) {
    %c0_i32 = arith.constant 0 : i32
    %c0_i32_0 = arith.constant 0 : i32
    %c0_i32_1 = arith.constant 0 : i32
    return %arg0, %c0_i32, %c0_i32_0 : i32, i32, i32
  }
}

</mosaic_0001>

<bundles_post_ra>
// kernel: tpu_custom_call.1
= control target key start
LH: loop header
LB: loop body
LE: loop exit
PB: predicated region body
PF: predicated region fallthrough
CT: control target
= control target key end

     0   :  { %s5628_s0 = inlined_call_operand.hbm [shape: f32[2,16,64], index: 0, kind: input, shape index: {}]   ;;  %s5629_s1 = inlined_call_operand.hbm [shape: f32[2,1,16], index: 1, kind: input, shape index: {}]   ;;  %s5630_s2 = inlined_call_operand.vmem [shape: f32[2,64,64], index: 2, kind: input, shape index: {}]   ;;  %s5631_s3 = inlined_call_operand.vmem [shape: f32[2,64,64], index: 3, kind: input, shape index: {}]   ;;  %s5632_s4 = inlined_call_operand.vmem [shape: f32[2,64,64], index: 4, kind: input, shape index: {}]   ;;  %s5633_s5 = inlined_call_operand.vmem [shape: f32[2,1,64], index: 5, kind: input, shape index: {}]   ;;  %s5634_s6 = inlined_call_operand.vmem [shape: f32[2,1,64], index: 6, kind: input, shape index: {}]   ;;  %s5635_s7 = inlined_call_operand.vmem [shape: f32[2,1,64], index: 7, kind: input, shape index: {}]   ;;  %s5636_s8 = inlined_call_operand.hbm [shape: f32[2,4,16,64], index: 8, kind: input, shape index: {}]   ;;  %s5637_s9 = inlined_call_operand.vmem [shape: f32[2,1,64], index: 9, kind: input, shape index: {}]   ;;  %s5638_s10 = inlined_call_operand.vmem [shape: f32[2,1,64], index: 10, kind: input, shape index: {}]   ;;  %s5639_s11 = inlined_call_operand.vmem [shape: f32[2,1,64], index: 11, kind: input, shape index: {}]   ;;  %s5640_s12 = inlined_call_operand.hbm [shape: f32[2,64,128], index: 12, kind: input, shape index: {}]   ;;  %s5641_s13 = inlined_call_operand.vmem [shape: f32[2,1,128], index: 13, kind: input, shape index: {}]   ;;  %s5642_s14 = inlined_call_operand.vmem [shape: f32[2,128,64], index: 14, kind: input, shape index: {}]   ;;  %s5643_s15 = inlined_call_operand.vmem [shape: f32[2,1,64], index: 15, kind: input, shape index: {}]   ;;  %s5644_s16 = inlined_call_operand.vmem [shape: f32[2,1,64], index: 16, kind: input, shape index: {}]   ;;  %s5645_s17 = inlined_call_operand.vmem [shape: f32[2,1,64], index: 17, kind: input, shape index: {}]   ;;  %s5646_s18 = inlined_call_operand.hbm [shape: f32[2,16,64], index: 18, kind: output, shape index: {}]  }
   0x1   :  { %5666 = sst [smem:[#allocation33_spill]] %s5628_s0 }
   0x2   :  { %5667 = sst [smem:[#allocation34_spill]] %s5629_s1 }
   0x3   :  { %5668 = sst [smem:[#allocation35_spill]] %s5630_s2 }
   0x4   :  { %5669 = sst [smem:[#allocation36_spill]] %s5631_s3 }
   0x5   :  { %5670 = sst [smem:[#allocation37_spill]] %s5632_s4 }
   0x6   :  { %5671 = sst [smem:[#allocation38_spill]] %s5634_s6 }
   0x7   :  { %5672 = sst [smem:[#allocation39_spill]] %s5635_s7 }
   0x8   :  { %5673 = sst [smem:[#allocation40_spill]] %s5636_s8 }
   0x9   :  { %5674 = sst [smem:[#allocation41_spill]] %s5637_s9 }
   0xa   :  { %5675 = sst [smem:[#allocation42_spill]] %s5638_s10 }
   0xb   :  { %5676 = sst [smem:[#allocation43_spill]] %s5639_s11 }
   0xc   :  { %5677 = sst [smem:[#allocation44_spill]] %s5640_s12 }
   0xd   :  { %5678 = sst [smem:[#allocation45_spill]] %s5641_s13 }
   0xe   :  { %5679 = sst [smem:[#allocation46_spill]] %s5642_s14 }
   0xf   :  { %5680 = sst [smem:[#allocation47_spill]] %s5643_s15 }
  0x10   :  { %5681 = sst [smem:[#allocation48_spill]] %s5644_s16 }
  0x11   :  { %5682 = sst [smem:[#allocation49_spill]] %s5645_s17 }
  0x12   :  { %5683 = sst [smem:[#allocation50_spill]] %s5646_s18 }
  0x13   :  { %23 = vsyncpa [#allocation4], 0 }
  0x14   :  { %25 = vsyncpa [#allocation4 + $0x1], 0 }
  0x15   :  { %26 = vsyncpa [#allocation7], 0 }
  0x16   :  { %28 = vsyncpa [#allocation7 + $0x1], 0 }
  0x17   :  { %29 = vsyncpa [#allocation10], 0 }
  0x18   :  { %31 = vsyncpa [#allocation10 + $0x1], 0 }
  0x19   :  { %32 = vsyncpa [#allocation5], 0 }
  0x1a   :  { %34 = vsyncpa [#allocation5 + $0x1], 0  ;;  %s4779_s27 = smov 0   ;;  %s4781_s28 = smov 0  }
  0x1b   :  { %s4783_s29 = smov 0   ;;  %s4785_s30 = smov 0  }
  0x1c   :  { %s4787_s0 = smov 0   ;;  %s4789_s19 = smov 0  }
  0x1d   :  { %s4791_s1 = smov 0   ;;  %s4793_s20 = smov 0  }
  0x1e   :  { %s4795_s21 = smov 0   ;;  %s4797_s22 = smov 0  }
  0x1f   :  { %s4799_s2 = smov 0  }
  0x20 LB: > { %5684 = sst [smem:[#allocation17_spill]] %s4629_s28  ;;  %s4835_s23 = sadd.s32 4294967295, %s4665_s2   ;;  %s4665_s2 = sphi %s4799_s2, %s40_s2   ;;  %s4661_s22 = sphi %s4797_s22, %s5760_s22   ;;  %s4657_s21 = sphi %s4795_s21, %s5759_s21   ;;  %s4653_s20 = sphi %s4793_s20, %s5758_s20   ;;  %s4649_s1 = sphi %s4791_s1, %s5757_s1   ;;  %s4645_s19 = sphi %s4789_s19, %s5756_s19   ;;  %s4641_s0 = sphi %s4787_s0, %s5755_s0   ;;  %s4637_s30 = sphi %s4785_s30, %s5754_s30   ;;  %s4633_s29 = sphi %s4783_s29, %s5753_s29   ;;  %s4629_s28 = sphi %s4781_s28, %s5752_s28   ;;  %s4625_s27 = sphi %s4779_s27, %s5751_s27  }
  0x21   : > { %5685 = sst [smem:[#allocation18_spill]] %s4633_s29  ;;  %s3847_s24 = sadd.s32 4294967294, %s4665_s2  }
  0x22   : > { %5686 = sst [smem:[#allocation19_spill]] %s4637_s30  ;;  %s49_s25 = sadd.s32 1, %s4657_s21 }
  0x23   : > { %5687 = sst [smem:[#allocation20_spill]] %s4641_s0  ;;  %s52_s26 = sadd.s32 1, %s4661_s22 }
  0x24   : > { %5688 = sst [smem:[#allocation21_spill]] %s4645_s19  ;;  %p50_p0 = scmp.ge.s32.totalorder %s49_s25, 2 }
  0x25   : > { %5689 = sst [smem:[#allocation22_spill]] %s4653_s20  ;;  %s59_s18 = sadd.s32 1, %s4645_s19 }
  0x26   : > { %5690 = sst [smem:[#allocation23_spill]] %s4657_s21  ;;  %p66_p1 = scmp.ne.s32.totalorder %s4645_s19, %s4641_s0 }
  0x27   : > { %5691 = sst [smem:[#allocation24_spill]] %s4661_s22  ;;  %p67_p2 = scmp.eq.s32.totalorder %s4665_s2, 0 }
  0x28   : > { %5692 = sst [smem:[#allocation25_spill]] %s4665_s2  ;;  %s5762_s25 = smov (%p50_p0, %s49_s25), 0 }
  0x29   : > { %5693 = sst [smem:[#allocation26_spill]] %s5762_s25  ;;  %s5764_s26 = smov (!%p50_p0, %s52_s26), %s4661_s22 }
  0x2a   : > { %p4852_p3 = por %p67_p2, %p66_p1  ;;  %p5649_p4 = scmp.ne.s32.totalorder %s4641_s0, %s4637_s30 }
  0x2b   : > { %p54_p5 = scmp.ge.s32.totalorder %s5764_s26, 2  ;;  %p73_p6 = scmp.eq.s32.totalorder %s4835_s23, 0 }
  0x2c   : > { %s264_s17 = ssub.s32 %s4657_s21, %s5762_s25  ;;  %s267_s16 = sadd.s32 1, %s4633_s29 }
  0x2d   : > { %s5766_s26 = smov (%p54_p5, %s5764_s26), 0  ;;  %p4869_p7 = por %p73_p6, %p5649_p4 }
  0x2e   : > { %5695 = sst [smem:[#allocation27_spill]] %s5766_s26  ;;  %p265_p8 = scmp.eq.s32.totalorder %s264_s17, 0 }
  0x2f   : > { %s5696_s15 = scalar_select %p4869_p7, 1, 0 }
  0x30   : > { %s56_s14 = ssub.s32 %s4661_s22, %s5766_s26  ;;  %p274_p9 = scmp.ne.s32.totalorder %s4633_s29, %s4629_s28 }
  0x31   : > { %p57_p10 = scmp.eq.s32.totalorder %s56_s14, 0  ;;  %p280_p11 = scmp.ne.s32.totalorder %s4629_s28, %s4625_s27 }
  0x32   : > { %s4880_s25 = scalar_select %p265_p8, %s4633_s29, %s267_s16  }
  0x33   : > { %s4883_s13 = scalar_select %p57_p10, %s4645_s19, %s59_s18  }
  0x34   : > { %5697 = sst [smem:[#allocation28_spill]] %s4880_s25  ;;  %p4887_p12 = por %p274_p9, %p67_p2 }
  0x35   : > { %5698 = sst [smem:[#allocation29_spill]] %s4883_s13  ;;  %p4893_p13 = por %p280_p11, %p73_p6 }
  0x36   : > { %p538_p0 = scmp.eq.s32.totalorder %s4835_s23, 3  ;;  %p544_p5 = scmp.eq.s32.totalorder %s3847_s24, 3 }
  0x37   : > { %p4277_p4 = scmp.lt.s32.totalorder %s4665_s2, 4  ;;  %p5703_p8 = scmp.ne.s32.totalorder %s4641_s0, %s4637_s30 }
  0x38   : > { %p4902_p7 = por %p538_p0, %p66_p1  ;;  %s4914_s17 = sand.u32 1, %s4645_s19  }
  0x39   : > { %p4909_p10 = por %p544_p5, %p5703_p8  ;;  %p4920_p2 = pnand %p4277_p4, %p4852_p3 }
  0x3a   : > { %s5701_s14 = scalar_select %p4902_p7, 1, 0 }
  0x3b   : > { %s5704_s16 = scalar_select %p4909_p10, 1, 0 }
  0x3c   : > { %5702 = sst [smem:[#allocation30_spill]] %s5701_s14  ;;  %s3850_s27 = sshll.u32 %s4914_s17, 4 }
  0x3d   : > { %5705 = sst [smem:[#allocation31_spill]] %s5704_s16  ;;  %s585_s24 = sand.u32 1, %s4665_s2  }
  0x3e   : > { %s3853_s26 = sshll.u32 %s4661_s22, 4  ;;  %s588_s13 = scalar_lea.vmem [#allocation6], %s4914_s17 }
  0x3f   : > { %s595_s25 = sshll.u32 %s588_s13, 4  ;;  %s5707_s16 = sld [smem:[#allocation34_spill]]  ;;  %s596_s25 = int_to_ptr.vmem [resolvable:$true] %s595_s25 }
  0x40   : > { %s4931_s20 = scalar_lea.sflag [#allocation7], %s585_s24  ;;  %p4423_p1 = pneg %p4920_p2 }
  0x41   : > { %s4434_s9 = scalar_lea.vmem %s596_s25, 16  ;;  %s4667_s7 = smov [#allocation6]  }
  0x42   : > { %p4435_p3 = scmp.ne.s32.totalorder %s596_s25, %s4434_s9  ;;  %s4439_s6 = sshll.u32 %s4667_s7, 4  ;;  %s4440_s6 = int_to_ptr.vmem [resolvable:$false] %s4439_s6 }
  0x43   : > { %s4441_s4 = scalar_lea.vmem %s4440_s6, 32  ;;  %p4442_p11 = scmp.lt.s32.totalorder %s596_s25, %s4440_s6 }
  0x44   : > { %p4437_p6 = pnand %p4435_p3, %p4423_p1  ;;  %p4443_p0 = scmp.lt.s32.totalorder %s4441_s4, %s4434_s9 }
  0x45   : > { %s593_s19 = scalar_lea.hbm %s5707_s16, %s3853_s26 }
  0x46   : > { %p4438_p9 = pneg %p4437_p6  ;;  %p4444_p5 = por %p4443_p0, %p4442_p11 }
  0x48   : > { %p4445_p8 = pnand %p4444_p5, %p4438_p9 }
  0x4a   : > { %4448 = shalt.err (!%p4445_p8)
}
  0x4b   : > { %4266 = dma.hbm_to_vmem [thread:$0]  (!%p4920_p2), %s593_s19, 16, %s596_s25, %s4931_s20  }
  0x4c   : > { %p4945_p3 = pnand %p4277_p4, %p4887_p12  ;;  %p3860_p6 = scmp.ge.s32.totalorder %s4665_s2, 1 }
  0x4d   : > { %p734_p9 = scmp.lt.s32.totalorder %s4665_s2, 5  ;;  %s3941_s6 = sshll.u32 %s4661_s22, 8 }
  0x4e   : > { %s568_s9 = scalar_lea.vmem [#allocation3], %s3850_s27  ;;  %s5710_s14 = sld [smem:[#allocation33_spill]] }
  0x4f   : > { %p4951_p11 = pnand %p3860_p6, %p734_p9  ;;  %s575_s13 = sshll.u32 %s568_s9, 4  ;;  %s576_s13 = int_to_ptr.vmem [resolvable:$true] %s575_s13 }
  0x50   : > { %s565_s11 = scalar_lea.sflag [#allocation4], %s4914_s17  ;;  %s4462_s19 = scalar_lea.vmem %s576_s13, 256 }
  0x51   : > { %p4463_p4 = scmp.ne.s32.totalorder %s576_s13, %s4462_s19  ;;  %s4668_s25 = smov [#allocation3]  }
  0x52   : > { %s4467_s24 = sshll.u32 %s4668_s25, 4  ;;  %s4468_s24 = int_to_ptr.vmem [resolvable:$false] %s4467_s24 }
  0x53   : > { %p4465_p12 = pnand %p4463_p4, %p4423_p1  ;;  %s4469_s2 = scalar_lea.vmem %s4468_s24, 512 }
  0x54   : > { %s574_s16 = scalar_lea.hbm %s5710_s14, %s3941_s6  ;;  %p4470_p5 = scmp.lt.s32.totalorder %s576_s13, %s4468_s24 }
  0x55   : > { %p4466_p0 = pneg %p4465_p12  ;;  %p4471_p8 = scmp.lt.s32.totalorder %s4469_s2, %s4462_s19 }
  0x57   : > { %p4472_p6 = por %p4471_p8, %p4470_p5 }
  0x59   : > { %p4473_p9 = pnand %p4472_p6, %p4466_p0 }
  0x5b   : > { %4476 = shalt.err (!%p4473_p9)
}
  0x5c   : > { %s4669_s27 = smov 128   ;;  %s4670_s17 = smov 8  }
  0x5d   : > { %4263 = dma.hbm_to_vmem [thread:$0]  (!%p4920_p2), %s574_s16, 256, %s576_s13, %s565_s11, %s4669_s27, %s4669_s27, %s4670_s17  }
  0x5e   : > { %s646_s6 = sand.u32 1, %s4633_s29   ;;  %s3942_s9 = sshll.u32 %s4657_s21, 10 }
  0x5f   : > { %s3854_s30 = sshll.u32 %s646_s6, 6  ;;  %s5711_s8 = sld [smem:[#allocation40_spill]] }
  0x60   : > { %s648_s19 = scalar_lea.vmem [#allocation8], %s3854_s30  ;;  %s5712_s12 = sld [smem:[#allocation44_spill]] }
  0x61   : > { %s655_s25 = sshll.u32 %s648_s19, 4  ;;  %p4479_p1 = pneg %p4945_p3  ;;  %s656_s25 = int_to_ptr.vmem [resolvable:$true] %s655_s25 }
  0x62   : > { %s4490_s18 = scalar_lea.vmem %s656_s25, 1024  ;;  %s4671_s13 = smov [#allocation8]  }
  0x63   : > { %p4491_p4 = scmp.ne.s32.totalorder %s656_s25, %s4490_s18  ;;  %s4495_s16 = sshll.u32 %s4671_s13, 4  ;;  %s4496_s16 = int_to_ptr.vmem [resolvable:$false] %s4495_s16 }
  0x64   : > { %s4497_s11 = scalar_lea.vmem %s4496_s16, 2048  ;;  %p4498_p0 = scmp.lt.s32.totalorder %s656_s25, %s4496_s16 }
  0x65   : > { %s654_s14 = scalar_lea.hbm %s5711_s8, %s3942_s9  ;;  %p4493_p2 = pnand %p4491_p4, %p4479_p1 }
  0x66   : > { %s4976_s3 = scalar_lea.hbm %s5712_s12, %s3942_s9  ;;  %p4499_p5 = scmp.lt.s32.totalorder %s4497_s11, %s4490_s18 }
  0x67   : > { %p4494_p12 = pneg %p4493_p2 }
  0x68   : > { %p4500_p8 = por %p4499_p5, %p4498_p0 }
  0x6a   : > { %p4501_p6 = pnand %p4500_p8, %p4494_p12 }
  0x6c   : > { %4504 = shalt.err (!%p4501_p6)
}
  0x6d   : > { %4269 = dma.hbm_to_vmem [thread:$0]  (!%p4945_p3), %s654_s14, 1024, %s656_s25, %s4931_s20, %s4669_s27, %s4669_s27, %s4670_s17  }
  0x6e   : > { %s687_s22 = scalar_lea.vmem [#allocation9], %s3854_s30  ;;  %s684_s26 = scalar_lea.sflag [#allocation10], %s646_s6 }
  0x6f   : > { %s694_s9 = sshll.u32 %s687_s22, 4  ;;  %s4672_s19 = smov [#allocation9]   ;;  %s695_s9 = int_to_ptr.vmem [resolvable:$true] %s694_s9 }
  0x70   : > { %s4518_s2 = scalar_lea.vmem %s695_s9, 1024  ;;  %s4523_s24 = sshll.u32 %s4672_s19, 4  ;;  %s4524_s24 = int_to_ptr.vmem [resolvable:$false] %s4523_s24 }
  0x71   : > { %p4519_p9 = scmp.ne.s32.totalorder %s695_s9, %s4518_s2  ;;  %s4525_s18 = scalar_lea.vmem %s4524_s24, 2048 }
  0x72   : > { %p4526_p12 = scmp.lt.s32.totalorder %s695_s9, %s4524_s24  ;;  %p4527_p0 = scmp.lt.s32.totalorder %s4525_s18, %s4518_s2 }
  0x73   : > { %p4521_p4 = pnand %p4519_p9, %p4479_p1 }
  0x74   : > { %p4528_p5 = por %p4527_p0, %p4526_p12 }
  0x75   : > { %p4522_p2 = pneg %p4521_p4 }
  0x77   : > { %p4529_p8 = pnand %p4528_p5, %p4522_p2 }
  0x79   : > { %4532 = shalt.err (!%p4529_p8)
}
  0x7a   : > { %4272 = dma.hbm_to_vmem [thread:$0]  (!%p4945_p3), %s4976_s3, 1024, %s695_s9, %s684_s26, %s4669_s27, %s4669_s27, %s4670_s17  }
  0x7b   : > { %738 = sbr.rel (%p4951_p11) target bundleno = 2578 (0xa12), region = 92 }
  0x80   : > { %s5001_s20 = sand.u32 1, %s4641_s0   ;;  %p5713_p1 = scmp.ne.s32.totalorder %s5696_s15, 0 }
  0x81   : > { %s5660_s6 = sshll.u32 %s5001_s20, 4  ;;  %s741_s30 = scalar_lea.sflag [#allocation4], %s5001_s20 }
  0x82   : > { %s5007_s14 = scalar_lea.vmem [#allocation3], %s5660_s6 }
  0x83   : > { %4604 = dma.done.wait (%p5713_p1), %s741_s30, 256  }
  0x84   : > { %4606 = vsyncadd (%p5713_p1), %s741_s30, 4294967040  ;;  %s749_s3 = sand.u32 1, %s4835_s23  }
  0x85   : > { %s750_s7 = scalar_lea.sflag [#allocation7], %s749_s3 }
  0x86   : > { %4608 = dma.done.wait (%p5713_p1), %s750_s7, 16  }
  0x87   : > { %4610 = vsyncadd (%p5713_p1), %s750_s7, 4294967280  ;;  %s759_s27 = sand.u32 1, %s4629_s28  }
  0x88   : > { %s3862_s17 = sshll.u32 %s759_s27, 6 }
  0x89   : > { %s5020_s25 = scalar_lea.vmem [#allocation8], %s3862_s17 }
  0x8a   : > { %4612 = dma.done.wait (%p4893_p13), %s750_s7, 1024  }
  0x8b   : > { %4614 = vsyncadd (%p4893_p13), %s750_s7, 4294966272  ;;  %s767_s23 = scalar_lea.sflag [#allocation10], %s759_s27  ;;  %s5026_s13 = scalar_lea.vmem [#allocation9], %s3862_s17 }
  0x8c   : > { %5714 = sst [smem:[#allocation32_spill]] %s5026_s13 }
  0x8d   : > { %4616 = dma.done.wait (%p4893_p13), %s767_s23, 1024  }
  0x8e   : > { %4618 = vsyncadd (%p4893_p13), %s767_s23, 4294966272  ;;  %p887_p3 = scmp.lt.s32.totalorder %s4649_s1, 1  ;;  %s5715_s2 = sld [smem:[#allocation35_spill]] }
  0x8f   : > { %s5716_s30 = sld [smem:[#allocation36_spill]]  ;;  %s5728_s13 = sshll.u32 %s5001_s20, 4 }
  0x90   : > { %s5034_s15 = scalar_select %p887_p3, %s4649_s1, 1 }
  0x91   : > { %s5717_s17 = sld [smem:[#allocation37_spill]]  ;;  %p3873_p13 = scmp.ne.s32.totalorder %s4649_s1, 0 }
  0x92   : > { %s3944_s16 = sshll.u32 %s5034_s15, 6  ;;  %s5719_s12 = sld [smem:[#allocation39_spill]] }
  0x93   : > { %s5723_s6 = sld [smem:[#allocation45_spill]]  ;;  %s3947_s10 = sshll.u32 %s5034_s15, 7 }
  0x94   : > { %s5044_s19 = scalar_lea.vmem %s5715_s2, %s3944_s16  ;;  %s5725_s2 = sld [smem:[#allocation47_spill]] }
  0x95   : > { %s5049_s3 = scalar_lea.vmem %s5716_s30, %s3944_s16  ;;  %s5726_s30 = sld [smem:[#allocation48_spill]] }
  0x96   : > { %s5729_s11 = scalar_lea.vmem (!%p3873_p13), [#allocation6], %s5001_s20 }
  0x97   : > { %s5054_s23 = scalar_lea.vmem %s5717_s17, %s3944_s16  ;;  %s5727_s16 = sld [smem:[#allocation49_spill]] }
  0x98   : > { %s910_s9 = scalar_lea.vmem %s5719_s12, %s5034_s15  ;;  %s5724_s12 = sld [smem:[#allocation46_spill]] }
  0x99   : > { %s922_s4 = scalar_lea.vmem %s5723_s6, %s5034_s15  ;;  %s5100_s17 = scalar_lea.vmem [#allocation11], %s5728_s13 }
  0x9a   : > { %s930_s0 = scalar_lea.vmem %s5725_s2, %s5034_s15  ;;  %940 = sbr.rel (%p3873_p13) target bundleno = 179 (0xb3), region = 112 }
  0x9b   : > { %s933_s29 = scalar_lea.vmem %s5726_s30, %s5034_s15 }
  0x9d   : > { %s936_s27 = scalar_lea.vmem %s5727_s16, %s5034_s15 }
  0x9e   : > { %s5084_s22 = scalar_lea.vmem %s5724_s12, %s3947_s10 }
  0x9f   : > { %v941_v0 = vld [vmem:[%s5007_s14] sm:$0xff]  ;;  %vm943_vm0 = vcmask 523264   ;;  %v942_v1 = vld [vmem:[%s5007_s14 + $0x8] sm:$0xff]  ;;  %v946_v2 = vlaneseq  ;;  %v4673_v5 = vmov 0   ;;  %v4674_v7 = vmov 1966171168  }
  0xa0   : > { %v953_v3 = vld [vmem:[%s5729_s11] sm:$0x1]  ;;  %944 = vst.msk [vmem:[%s5100_s17] sm:$0xff] %vm943_vm0, %v941_v0  ;;  %945 = vst.msk [vmem:[%s5100_s17 + $0x8] sm:$0xff] %vm943_vm0, %v942_v1  ;;  %v960_v8 = vunpack.c.l.s4 %v4674_v7  ;;  %vm980_vm5 = vcmask 130048  }
  0xa1   : > { %vm954_vm1 = vcmp.gt.f32.partialorder %v953_v3, 0.0  ;;  %v947_v4 = vshrl.u32 %v946_v2, 7  ;;  %v950_v13 = vand.u32 127, %v946_v2  ;;  %v4675_v18 = vmov -1e+30  }
  0xa2   : > { %v957_v6 = vsel %vm954_vm1, 1, %v4673_v5  ;;  %v961_v10 = vunpack.c.0.s8 %v960_v8 }
  0xa3   : > { %v958_v9 = vcombine.low %v957_v6, %v957_v6  ;;  %v948_v15 = vadd.s32 8, %v947_v4  ;;  %vm951_vm2 = vcmp.ge.s32.totalorder %v947_v4, %v950_v13 }
  0xa4   : > { %v964_v11 = vsub.s32 %v961_v10, %v947_v4 }
  0xa5   : > { %vm952_vm3 = vcmp.ge.s32.totalorder %v948_v15, %v950_v13 }
  0xa6   : > { %v965_v12 = vrot.slane %v958_v9, %v964_v11 }
  0xa8   : > { %v966_v14 = vcombine.low %v965_v12, %v965_v12 }
  0xaa   : > { %v973_v16 = vrot.slane %v966_v14, %v964_v11 }
  0xac   : > { %v974_v17 = vcombine.low %v973_v16, %v973_v16 }
  0xae   : > { %vm975_vm4 = vcmp.ne.s32.totalorder %v974_v17, 0 }
  0xaf   : > { %vm976_vm6 = vmand %vm951_vm2, %vm975_vm4 }
  0xb0   : > { %v978_v19 = vsel %vm976_vm6, 0.0, %v4675_v18  ;;  %vm977_vm7 = vmand %vm952_vm3, %vm975_vm4 }
  0xb1   : > { %981 = vst.msk [vmem:[#allocation2] sm:$0xff] %vm980_vm5, %v978_v19  ;;  %v979_v20 = vsel %vm977_vm7, 0.0, %v4675_v18 }
  0xb2   : > { %982 = vst.msk [vmem:[#allocation2 + $0x8] sm:$0xff] %vm980_vm5, %v979_v20 }
  0xb3 PF: > { %v998_v21 = vld [vmem:[%s5049_s3 + $0x38] sm:$0xff]  ;;  %v997_v23 = vld [vmem:[%s5049_s3 + $0x30] sm:$0xff]  ;;  %v996_v25 = vld [vmem:[%s5049_s3 + $0x28] sm:$0xff]  ;;  %vm1057_vm8 = vcmask 523264   ;;  %s5732_s8 = scalar_lea.vmem %s5633_s5, %s5034_s15  ;;  %s4676_s12 = smov 80   ;;  %v1164_v59 = vlaneseq  ;;  %vm2179_vm9 = vcmask 130048  }
  0xb4   : > { %v990_v22 = vld [vmem:[%s5044_s19 + $0x38] sm:$0xff]  ;;  %4074 = vmatprep.subr.mxu1 %v998_v21  ;;  %v989_v24 = vld [vmem:[%s5044_s19 + $0x30] sm:$0xff]  ;;  %v988_v26 = vld [vmem:[%s5044_s19 + $0x28] sm:$0xff]  ;;  %s4677_s26 = smov 112   ;;  %s4678_s21 = smov 96  }
  0xb5   : > { %4055 = vmatprep.subr.mxu0 %v990_v22  ;;  %4075 = vmatpush3.msra.mxu1 %v998_v21  ;;  %v995_v27 = vld [vmem:[%s5049_s3 + $0x20] sm:$0xff]  ;;  %v994_v29 = vld [vmem:[%s5049_s3 + $0x18] sm:$0xff]  ;;  %v993_v31 = vld [vmem:[%s5049_s3 + $0x10] sm:$0xff]  ;;  %v4679_v57 = vmov 1983009808   ;;  %v1165_v63 = vshrl.u32 %v1164_v59, 7 }
  0xb6   : > { %4056 = vmatpush3.msra.mxu0 %v990_v22  ;;  %4076 = vmatprep.subr.mxu1 %v997_v23  ;;  %v987_v28 = vld [vmem:[%s5044_s19 + $0x20] sm:$0xff]  ;;  %v986_v30 = vld [vmem:[%s5044_s19 + $0x18] sm:$0xff]  ;;  %v985_v32 = vld [vmem:[%s5044_s19 + $0x10] sm:$0xff]  ;;  %v1162_v58 = vunpack.c.l.s4 %v4679_v57  ;;  %v4680_v60 = vmov 1934713408   ;;  %s5734_s18 = sld [smem:[#allocation41_spill]] }
  0xb7   : > { %4057 = vmatprep.subr.mxu0 %v989_v24  ;;  %4077 = vmatpush3.msra.mxu1 %v997_v23  ;;  %v992_v33 = vld [vmem:[%s5049_s3 + $0x8] sm:$0xff]  ;;  %v991_v35 = vld [vmem:[%s5049_s3] sm:$0xff]  ;;  %v1006_v39 = vld [vmem:[%s5054_s23 + $0x38] sm:$0xff]  ;;  %v1194_v61 = vunpack.c.l.s4 %v4680_v60  ;;  %s5736_s28 = sld [smem:[#allocation32_spill]] }
  0xb8   : > { %4058 = vmatpush3.msra.mxu0 %v989_v24  ;;  %4078 = vmatprep.subr.mxu1 %v996_v25  ;;  %v984_v34 = vld [vmem:[%s5044_s19 + $0x8] sm:$0xff]  ;;  %v983_v37 = vld [vmem:[%s5044_s19] sm:$0xff]  ;;  %s5730_s19 = sld [smem:[#allocation38_spill]]  ;;  %v1005_v41 = vld [vmem:[%s5054_s23 + $0x30] sm:$0xff]  ;;  %v1163_v62 = vunpack.c.0.s8 %v1162_v58 }
  0xb9   : > { %4059 = vmatprep.subr.mxu0 %v988_v26  ;;  %4079 = vmatpush3.msra.mxu1 %v996_v25  ;;  %v1049_v36 = vld [vmem:[%s5100_s17] sm:$0xff]  ;;  %v1050_v38 = vld [vmem:[%s5100_s17 + $0x8] sm:$0xff]  ;;  %v1195_v2 = vunpack.c.0.s8 %v1194_v61  ;;  %s5737_s13 = sld [smem:[#allocation42_spill]] }
  0xba   : > { %4060 = vmatpush3.msra.mxu0 %v988_v26  ;;  %4080 = vmatprep.subr.mxu1 %v995_v27  ;;  %v3874_v43 = vld [vmem:[%s5732_s8] ss:$0 sm:$0xff]  ;;  %v1004_v44 = vld [vmem:[%s5054_s23 + $0x28] sm:$0xff]  ;;  %v1002_v49 = vld [vmem:[%s5054_s23 + $0x18] sm:$0xff]  ;;  %v5178_v3 = vsub.s32 %v1163_v62, %v1165_v63  ;;  %s5747_s16 = sld [smem:[#allocation50_spill]] }
  0xbb   : > { %4061 = vmatprep.subr.mxu0 %v987_v28  ;;  %4081 = vmatpush3.msra.mxu1 %v995_v27  ;;  %v1003_v47 = vld [vmem:[%s5054_s23 + $0x20] sm:$0xff]  ;;  %v1001_v51 = vld [vmem:[%s5054_s23 + $0x10] sm:$0xff]  ;;  %v1000_v53 = vld [vmem:[%s5054_s23 + $0x8] sm:$0xff]  ;;  %v5182_v10 = vsub.s32 %v1195_v2, %v1165_v63 }
  0xbc   : > { %4062 = vmatpush3.msra.mxu0 %v987_v28  ;;  %4082 = vmatprep.subr.mxu1 %v994_v29  ;;  %v999_v56 = vld [vmem:[%s5054_s23] sm:$0xff]  ;;  %s5735_s30 = scalar_lea.vmem %s5734_s18, %s5034_s15 }
  0xbd   : > { %4063 = vmatprep.subr.mxu0 %v986_v30  ;;  %4083 = vmatpush3.msra.mxu1 %v994_v29 }
  0xbe   : > { %4064 = vmatpush3.msra.mxu0 %v986_v30  ;;  %4084 = vmatprep.subr.mxu1 %v993_v31  ;;  %s5731_s3 = scalar_lea.vmem %s5730_s19, %s5034_s15  ;;  %s5739_s19 = sld [smem:[#allocation43_spill]] }
  0xbf   : > { %4065 = vmatprep.subr.mxu0 %v985_v32  ;;  %4085 = vmatpush3.msra.mxu1 %v993_v31  ;;  %v3877_v40 = vld [vmem:[%s5731_s3] ss:$0 sm:$0xff]  ;;  %s5738_s11 = scalar_lea.vmem %s5737_s13, %s5034_s15  ;;  %s4681_s13 = smov [#allocation11]  }
  0xc0   : > { %4066 = vmatpush3.msra.mxu0 %v985_v32  ;;  %4086 = vmatprep.subr.mxu1 %v992_v33 }
  0xc1   : > { %4067 = vmatprep.subr.mxu0 %v984_v34  ;;  %4087 = vmatpush3.msra.mxu1 %v992_v33 }
  0xc2   : > { %4068 = vmatpush3.msra.mxu0 %v984_v34  ;;  %4088 = vmatprep.subr.mxu1 %v991_v35 }
  0xc3   : > { %4090 = vmatprep.mubr.msk.f32.mxu1 %vm1057_vm8, %v1049_v36  ;;  %4089 = vmatpush3.msra.mxu1 %v991_v35 }
  0xc4   : > { %4069 = vmatprep.subr.mxu0 %v983_v37  ;;  %4091 = vmatmul.mubr.msk.f32.vlgmr.msra.gmra.mxu1 %vm1057_vm8, %v1050_v38  ;;  %s5740_s3 = scalar_lea.vmem %s5739_s19, %s5034_s15  ;;  %s3548_s15 = scalar_lea.sflag [#allocation5], %s5001_s20 }
  0xc5   : > { %4070 = vmatpush3.msra.mxu0 %v983_v37  ;;  %4071 = vmatprep.mubr.msk.f32.mxu0 %vm1057_vm8, %v1049_v36 }
  0xc6   : > { %4072 = vmatmul.mubr.msk.f32.vlgmr.msra.gmra.mxu0 %vm1057_vm8, %v1050_v38  ;;  %4093 = vmatprep.subr.mxu0 %v1006_v39 }
  0xc7   : > { %4109 = vmatprep.mubr.msk.f32.mxu0 %vm1057_vm8, %v1049_v36  ;;  %4094 = vmatpush3.msra.mxu0 %v1006_v39 }
  0xc8   : > { %4095 = vmatprep.subr.mxu0 %v1005_v41 }
  0xc9   : > { %4096 = vmatpush3.msra.mxu0 %v1005_v41 }
  0xca   : > { %4097 = vmatprep.subr.mxu0 %v1004_v44 }
  0xcb   : > { %4098 = vmatpush3.msra.mxu0 %v1004_v44 }
  0xcc   : > { %4099 = vmatprep.subr.mxu0 %v1003_v47 }
  0xcd   : > { %4100 = vmatpush3.msra.mxu0 %v1003_v47 }
  0xce   : > { %4101 = vmatprep.subr.mxu0 %v1002_v49 }
  0xcf   : > { %4102 = vmatpush3.msra.mxu0 %v1002_v49 }
  0xd0   : > { %4103 = vmatprep.subr.mxu0 %v1001_v51 }
  0xd1   : > { %4104 = vmatpush3.msra.mxu0 %v1001_v51 }
  0xd2   : > { %4105 = vmatprep.subr.mxu0 %v1000_v53 }
  0xd3   : > { %4106 = vmatpush3.msra.mxu0 %v1000_v53 }
  0xd4   : > { %4107 = vmatprep.subr.mxu0 %v999_v56 }
  0xd5   : > { %4108 = vmatpush3.msra.mxu0 %v999_v56 }
  0xd6   : > { %4110 = vmatmul.mubr.msk.f32.vlgmr.msra.gmra.mxu0 %vm1057_vm8, %v1050_v38 }
 0x184   : > { %v4092_v42 = vpop.f32.mrf.mxu1 }
 0x185   : > { %v1373_v45 = vadd.f32 %v4092_v42, %v3877_v40 }
 0x186   : > { %v4073_v46 = vpop.f32.mrf.mxu0  ;;  %v1367_v50 = vpop.f32.mrf.mxu1 }
 0x187   : > { %v5146_v48 = vadd.f32 %v4073_v46, %v3874_v43  ;;  %1392 = vrot.lane.b32.xlu1 %v1373_v45, %s4676_s12  ;;  %1380 = vrot.lane.b32.xlu0 %v1373_v45, %s4677_s26  ;;  %v5155_v52 = vadd.f32 %v3877_v40, %v1367_v50 }
 0x188   : > { %v1130_v54 = vpop.f32.mrf.mxu0 }
 0x189   : > { %v5162_v55 = vadd.f32 %v3874_v43, %v1130_v54 }
 0x18b   : > { %1386 = vrot.lane.b32.xlu0 %v1373_v45, %s4678_s21  ;;  %1143 = vrot.lane.b32.xlu1 %v5146_v48, %s4677_s26 }
 0x18f   : > { %1384 = vrot.lane.b32.xlu0 %v5155_v52, %s4678_s21  ;;  %1378 = vrot.lane.b32.xlu1 %v5155_v52, %s4677_s26 }
 0x193   : > { %1390 = vrot.lane.b32.xlu1 %v5155_v52, %s4676_s12  ;;  %1141 = vrot.lane.b32.xlu0 %v5162_v55, %s4677_s26 }
 0x197   : > { %1147 = vrot.lane.b32.xlu1 %v5162_v55, %s4678_s21  ;;  %1153 = vrot.lane.b32.xlu0 %v5162_v55, %s4676_s12 }
 0x19b   : > { %1155 = vrot.lane.b32.xlu1 %v5146_v48, %s4676_s12  ;;  %1149 = vrot.lane.b32.xlu0 %v5146_v48, %s4678_s21 }
 0x1f9   : > { %v1393_v0 = vpop.permute.xlu1 %1392  ;;  %v1381_v1 = vpop.permute.xlu0 %1380 }
 0x1fa   : > { %v1480_v4 = vcombine.low %v1381_v1, %v1393_v0  ;;  %v1481_v5 = vcombine.high %v1381_v1, %v1393_v0 }
 0x1fc   : > { %v1488_v11 = vrot.slane %v1480_v4, %v5178_v3  ;;  %v1495_v12 = vrot.slane %v1481_v5, %v5178_v3 }
 0x1fd   : > { %v1387_v6 = vpop.permute.xlu0 %1386  ;;  %v5180_v7 = vpop.permute.xlu1 %1143 }
 0x1fe   : > { %v1464_v8 = vcombine.low %v1373_v45, %v1387_v6  ;;  %v1465_v9 = vcombine.high %v1373_v45, %v1387_v6 }
 0x200   : > { %v1472_v13 = vrot.slane %v1464_v8, %v5178_v3  ;;  %v1479_v14 = vrot.slane %v1465_v9, %v5178_v3 }
 0x201   : > { %v1385_v15 = vpop.permute.xlu0 %1384  ;;  %v1379_v16 = vpop.permute.xlu1 %1378 }
 0x202   : > { %v1496_v17 = vcombine.low %v1472_v13, %v1488_v11  ;;  %v1497_v18 = vcombine.high %v1472_v13, %v1488_v11  ;;  %v1512_v19 = vcombine.low %v1479_v14, %v1495_v12  ;;  %v1513_v20 = vcombine.high %v1479_v14, %v1495_v12 }
 0x203   : > { %v1396_v21 = vcombine.low %v5155_v52, %v1385_v15  ;;  %v1397_v22 = vcombine.high %v5155_v52, %v1385_v15 }
 0x204   : > { %v1504_v23 = vrot.slane %v1496_v17, %v5182_v10  ;;  %v1511_v24 = vrot.slane %v1497_v18, %v5182_v10  ;;  %v1520_v25 = vrot.slane %v1512_v19, %v5182_v10  ;;  %v1527_v26 = vrot.slane %v1513_v20, %v5182_v10 }
 0x205   : > { %v1391_v27 = vpop.permute.xlu1 %1390  ;;  %v1142_v28 = vpop.permute.xlu0 %1141  ;;  %v1404_v37 = vrot.slane %v1396_v21, %v5178_v3  ;;  %v1411_v38 = vrot.slane %v1397_v22, %v5178_v3 }
 0x206   : > { %v1973_v29 = vcombine.low %v1504_v23, %v1511_v24  ;;  %v3889_v30 = vcombine.high %v1504_v23, %v1511_v24  ;;  %v1989_v31 = vcombine.low %v1520_v25, %v1527_v26  ;;  %v3890_v32 = vcombine.high %v1520_v25, %v1527_v26 }
 0x207   : > { %v1412_v33 = vcombine.low %v1379_v16, %v1391_v27  ;;  %v1413_v34 = vcombine.high %v1379_v16, %v1391_v27 }
 0x208   : > { %v5195_v35 = vrot.slane %v1973_v29, %v5178_v3  ;;  %v5198_v36 = vrot.slane %v3889_v30, %v5178_v3  ;;  %v5203_v39 = vrot.slane %v1989_v31, %v5178_v3  ;;  %v5206_v40 = vrot.slane %v3890_v32, %v5178_v3 }
 0x209   : > { %v1420_v41 = vrot.slane %v1412_v33, %v5178_v3  ;;  %v1427_v42 = vrot.slane %v1413_v34, %v5178_v3  ;;  %v1148_v43 = vpop.permute.xlu1 %1147  ;;  %v1154_v44 = vpop.permute.xlu0 %1153 }
 0x20a   : > { %v1159_v45 = vcombine.low %v5162_v55, %v1148_v43  ;;  %v1160_v46 = vcombine.high %v5162_v55, %v1148_v43  ;;  %v1175_v47 = vcombine.low %v1142_v28, %v1154_v44  ;;  %v1176_v49 = vcombine.high %v1142_v28, %v1154_v44 }
 0x20b   : > { %v1428_v50 = vcombine.low %v1404_v37, %v1420_v41  ;;  %v1429_v51 = vcombine.high %v1404_v37, %v1420_v41  ;;  %v1444_v52 = vcombine.low %v1411_v38, %v1427_v42  ;;  %v1445_v53 = vcombine.high %v1411_v38, %v1427_v42 }
 0x20c   : > { %v1167_v54 = vrot.slane %v1159_v45, %v5178_v3  ;;  %v1174_v56 = vrot.slane %v1160_v46, %v5178_v3  ;;  %v1183_v57 = vrot.slane %v1175_v47, %v5178_v3  ;;  %v1190_v58 = vrot.slane %v1176_v49, %v5178_v3 }
 0x20d   : > { %v1436_v59 = vrot.slane %v1428_v50, %v5182_v10  ;;  %v1443_v60 = vrot.slane %v1429_v51, %v5182_v10  ;;  %v1452_v55 = vrot.slane %v1444_v52, %v5182_v10  ;;  %v1459_v61 = vrot.slane %v1445_v53, %v5182_v10  ;;  %v1156_v13 = vpop.permute.xlu1 %1155  ;;  %v1150_v14 = vpop.permute.xlu0 %1149 }
 0x20e   : > { %v1191_v62 = vcombine.low %v1167_v54, %v1183_v57  ;;  %v1192_v63 = vcombine.high %v1167_v54, %v1183_v57  ;;  %v1207_v0 = vcombine.low %v1174_v56, %v1190_v58  ;;  %v1208_v1 = vcombine.high %v1174_v56, %v1190_v58 }
 0x20f   : > { %v1905_v2 = vcombine.low %v1436_v59, %v1443_v60  ;;  %v3887_v4 = vcombine.high %v1436_v59, %v1443_v60  ;;  %v1921_v5 = vcombine.low %v1452_v55, %v1459_v61  ;;  %v3888_v6 = vcombine.high %v1452_v55, %v1459_v61 }
 0x210   : > { %v1199_v8 = vrot.slane %v1191_v62, %v5182_v10  ;;  %v1206_v9 = vrot.slane %v1192_v63, %v5182_v10  ;;  %v1215_v11 = vrot.slane %v1207_v0, %v5182_v10  ;;  %v1222_v12 = vrot.slane %v1208_v1, %v5182_v10 }
 0x211   : > { %v5225_v15 = vrot.slane %v1905_v2, %v5178_v3  ;;  %v5228_v16 = vrot.slane %v3887_v4, %v5178_v3  ;;  %v5231_v17 = vrot.slane %v1921_v5, %v5178_v3  ;;  %v5234_v18 = vrot.slane %v3888_v6, %v5178_v3 }
 0x212   : > { %v1769_v19 = vcombine.low %v1199_v8, %v1206_v9  ;;  %v3883_v20 = vcombine.high %v1199_v8, %v1206_v9  ;;  %v1785_v21 = vcombine.low %v1215_v11, %v1222_v12  ;;  %v3884_v22 = vcombine.high %v1215_v11, %v1222_v12 }
 0x213   : > { %v1243_v23 = vcombine.low %v5180_v7, %v1156_v13  ;;  %v1244_v24 = vcombine.high %v5180_v7, %v1156_v13  ;;  %v1227_v25 = vcombine.low %v5146_v48, %v1150_v14  ;;  %v1228_v26 = vcombine.high %v5146_v48, %v1150_v14 }
 0x214   : > { %v5241_v27 = vrot.slane %v1769_v19, %v5178_v3  ;;  %v5244_v28 = vrot.slane %v3883_v20, %v5178_v3  ;;  %v5247_v29 = vrot.slane %v1785_v21, %v5178_v3  ;;  %v5250_v30 = vrot.slane %v3884_v22, %v5178_v3 }
 0x215   : > { %v1251_v31 = vrot.slane %v1243_v23, %v5178_v3  ;;  %v1258_v7 = vrot.slane %v1244_v24, %v5178_v3  ;;  %v1235_v32 = vrot.slane %v1227_v25, %v5178_v3  ;;  %v1242_v48 = vrot.slane %v1228_v26, %v5178_v3 }
 0x216   : > { %v2005_v33 = vcombine.low %v5195_v35, %v5198_v36  ;;  %v2021_v34 = vcombine.low %v5203_v39, %v5206_v40  ;;  %v1937_v37 = vcombine.low %v5225_v15, %v5228_v16  ;;  %v1953_v38 = vcombine.low %v5231_v17, %v5234_v18 }
 0x217   : > { %v1259_v41 = vcombine.low %v1235_v32, %v1251_v31  ;;  %v1260_v42 = vcombine.high %v1235_v32, %v1251_v31  ;;  %v1275_v43 = vcombine.low %v1242_v48, %v1258_v7  ;;  %v1276_v44 = vcombine.high %v1242_v48, %v1258_v7 }
 0x218   : > { %v2013_v45 = vrot.slane %v2005_v33, %v5182_v10  ;;  %v2029_v46 = vrot.slane %v2021_v34, %v5182_v10  ;;  %v1945_v47 = vrot.slane %v1937_v37, %v5182_v10  ;;  %v1961_v49 = vrot.slane %v1953_v38, %v5182_v10  ;;  %v4111_v37 = vpop.f32.mrf.mxu0 }
 0x219   : > { %v1267_v50 = vrot.slane %v1259_v41, %v5182_v10  ;;  %v1274_v51 = vrot.slane %v1260_v42, %v5182_v10  ;;  %v1283_v52 = vrot.slane %v1275_v43, %v5182_v10  ;;  %v1290_v53 = vrot.slane %v1276_v44, %v5182_v10  ;;  %v2178_v41 = vld [vmem:[#allocation2 + $0x8] sm:$0xff]  ;;  %v2177_v44 = vld [vmem:[#allocation2] sm:$0xff] }
 0x21a   : > { %v2037_v54 = vcombine.low %v2013_v45, %v2029_v46  ;;  %v2038_v56 = vcombine.high %v2013_v45, %v2029_v46  ;;  %v1969_v57 = vcombine.low %v1945_v47, %v1961_v49  ;;  %v1970_v58 = vcombine.high %v1945_v47, %v1961_v49  ;;  %v5328_v38 = vpop.f32.mrf.mxu0 }
 0x21b   : > { %v1837_v59 = vcombine.low %v1267_v50, %v1274_v51  ;;  %v3885_v60 = vcombine.high %v1267_v50, %v1274_v51  ;;  %v1853_v55 = vcombine.low %v1283_v52, %v1290_v53  ;;  %v3886_v61 = vcombine.high %v1283_v52, %v1290_v53 }
 0x21c   : > { %4112 = vmatprep.subr.msk.mxu0 %vm2179_vm9, %v2037_v54  ;;  %4119 = vmatprep.subr.msk.mxu1 %vm2179_vm9, %v2038_v56  ;;  %v2006_v62 = vcombine.high %v5195_v35, %v5198_v36  ;;  %v2022_v63 = vcombine.high %v5203_v39, %v5206_v40  ;;  %v1801_v0 = vcombine.low %v5241_v27, %v5244_v28 }
 0x21d   : > { %v1844_v1 = vrot.slane %v1837_v59, %v5178_v3  ;;  %v1852_v2 = vrot.slane %v3885_v60, %v5178_v3  ;;  %v1860_v4 = vrot.slane %v1853_v55, %v5178_v3  ;;  %v1868_v5 = vrot.slane %v3886_v61, %v5178_v3  ;;  %4113 = vmatpush3.xpose.msk.msra.mxu0 %vm2179_vm9, %v2037_v54  ;;  %v5340_v61 = vld [vmem:[%s910_s9] ss:$0 sm:$0xff] }
 0x21e   : > { %4120 = vmatpush3.xpose.msk.msra.mxu1 %vm2179_vm9, %v2038_v56  ;;  %4114 = vmatprep.subr.msk.mxu0 %vm2179_vm9, %v1969_v57  ;;  %v2020_v35 = vrot.slane %v2006_v62, %v5182_v10  ;;  %v2036_v36 = vrot.slane %v2022_v63, %v5182_v10  ;;  %v1809_v6 = vrot.slane %v1801_v0, %v5182_v10 }
 0x21f   : > { %v1869_v39 = vcombine.low %v1844_v1, %v1852_v2  ;;  %v1885_v40 = vcombine.low %v1860_v4, %v1868_v5  ;;  %4121 = vmatprep.subr.msk.mxu1 %vm2179_vm9, %v1970_v58  ;;  %v1817_v11 = vcombine.low %v5247_v29, %v5250_v30  ;;  %v1938_v12 = vcombine.high %v5225_v15, %v5228_v16 }
 0x220   : > { %v2039_v8 = vcombine.low %v2020_v35, %v2036_v36  ;;  %v2040_v9 = vcombine.high %v2020_v35, %v2036_v36  ;;  %v1954_v19 = vcombine.high %v5231_v17, %v5234_v18  ;;  %v1802_v20 = vcombine.high %v5241_v27, %v5244_v28 }
 0x221   : > { %4115 = vmatpush3.xpose.msk.msra.mxu0 %vm2179_vm9, %v1969_v57  ;;  %v1877_v13 = vrot.slane %v1869_v39, %v5182_v10  ;;  %v1893_v14 = vrot.slane %v1885_v40, %v5182_v10  ;;  %v1825_v21 = vrot.slane %v1817_v11, %v5182_v10  ;;  %v1952_v15 = vrot.slane %v1938_v12, %v5182_v10 }
 0x222   : > { %4122 = vmatpush3.xpose.msk.msra.mxu1 %vm2179_vm9, %v1970_v58  ;;  %4126 = vmatprep.subr.msk.mxu0 %vm2179_vm9, %v2039_v8  ;;  %v1818_v16 = vcombine.high %v5247_v29, %v5250_v30  ;;  %v1968_v17 = vrot.slane %v1954_v19, %v5182_v10  ;;  %v1816_v18 = vrot.slane %v1802_v20, %v5182_v10 }
 0x223   : > { %4133 = vmatprep.subr.msk.mxu1 %vm2179_vm9, %v2040_v9  ;;  %v1901_v22 = vcombine.low %v1877_v13, %v1893_v14  ;;  %v1902_v23 = vcombine.high %v1877_v13, %v1893_v14  ;;  %v1833_v24 = vcombine.low %v1809_v6, %v1825_v21  ;;  %v1834_v25 = vcombine.high %v1809_v6, %v1825_v21 }
 0x224   : > { %v1832_v26 = vrot.slane %v1818_v16, %v5182_v10  ;;  %v1870_v27 = vcombine.high %v1844_v1, %v1852_v2  ;;  %v1886_v28 = vcombine.high %v1860_v4, %v1868_v5  ;;  %v1971_v29 = vcombine.low %v1952_v15, %v1968_v17 }
 0x225   : > { %4116 = vmatprep.mubr.msk.f32.mxu0 %vm2179_vm9, %v1833_v24  ;;  %4123 = vmatprep.mubr.msk.f32.mxu1 %vm2179_vm9, %v1834_v25  ;;  %v1972_v31 = vcombine.high %v1952_v15, %v1968_v17  ;;  %v1610_v62 = vadd.f32 %v4111_v37, %v5340_v61 }
 0x226   : > { %4117 = vmatmul.mubr.msk.f32.vlgmr.msra.gmra.mxu0 %vm2179_vm9, %v1901_v22  ;;  %4124 = vmatmul.mubr.msk.f32.vlgmr.msra.gmra.mxu1 %vm2179_vm9, %v1902_v23  ;;  %v1835_v30 = vcombine.low %v1816_v18, %v1832_v26  ;;  %v1836_v7 = vcombine.high %v1816_v18, %v1832_v26  ;;  %v1884_v32 = vrot.slane %v1870_v27, %v5182_v10 }
 0x227   : > { %4127 = vmatpush3.xpose.msk.msra.mxu0 %vm2179_vm9, %v2039_v8  ;;  %4134 = vmatpush3.xpose.msk.msra.mxu1 %vm2179_vm9, %v2040_v9  ;;  %v1900_v48 = vrot.slane %v1886_v28, %v5182_v10 }
 0x228   : > { %4128 = vmatprep.subr.msk.mxu0 %vm2179_vm9, %v1971_v29  ;;  %4130 = vmatprep.mubr.msk.f32.mxu0 %vm2179_vm9, %v1835_v30 }
 0x229   : > { %4135 = vmatprep.subr.msk.mxu1 %vm2179_vm9, %v1972_v31  ;;  %4137 = vmatprep.mubr.msk.f32.mxu1 %vm2179_vm9, %v1836_v7  ;;  %v1903_v33 = vcombine.low %v1884_v32, %v1900_v48  ;;  %v1904_v34 = vcombine.high %v1884_v32, %v1900_v48 }
 0x22b   : > { %4129 = vmatpush3.xpose.msk.msra.mxu0 %vm2179_vm9, %v1971_v29  ;;  %4136 = vmatpush3.xpose.msk.msra.mxu1 %vm2179_vm9, %v1972_v31 }
 0x22e   : > { %4131 = vmatmul.mubr.msk.f32.vlgmr.msra.gmra.mxu0 %vm2179_vm9, %v1903_v33  ;;  %4138 = vmatmul.mubr.msk.f32.vlgmr.msra.gmra.mxu1 %vm2179_vm9, %v1904_v34 }
 0x2e6   : > { %v4118_v42 = vpop.f32.mrf.mxu0  ;;  %v4125_v43 = vpop.f32.mrf.mxu1 }
 0x2e7   : > { %v2264_v45 = vadd.f32 %v4118_v42, %v2178_v41  ;;  %v2351_v46 = vadd.f32 %v4125_v43, %v2178_v41 }
 0x2e8   : > { %v2258_v47 = vpop.f32.mrf.mxu0  ;;  %v2345_v52 = vpop.f32.mrf.mxu1 }
 0x2e9   : > { %v2259_v49 = vadd.f32 %v2258_v47, %v2177_v44  ;;  %v2537_v50 = vsel %vm2179_vm9, %v2351_v46, -inf  ;;  %v2531_v51 = vsel %vm2179_vm9, %v2264_v45, -inf  ;;  %v2346_v53 = vadd.f32 %v2345_v52, %v2177_v44 }
 0x2ea   : > { %2538 = vmax.xlane.f32.xlu0 %v2537_v50  ;;  %2532 = vmax.xlane.f32.xlu1 %v2531_v51 }
 0x2eb   : > { %v2528_v54 = vsel %vm2179_vm9, %v2259_v49, -inf  ;;  %v2534_v58 = vsel %vm2179_vm9, %v2346_v53, -inf }
 0x2ee   : > { %v4132_v56 = vpop.f32.mrf.mxu0  ;;  %2529 = vmax.xlane.f32.xlu0 %v2528_v54  ;;  %v4139_v59 = vpop.f32.mrf.mxu1 }
 0x2ef   : > { %v2438_v57 = vadd.f32 %v4132_v56, %v2178_v41  ;;  %v2525_v60 = vadd.f32 %v4139_v59, %v2178_v41 }
 0x2f0   : > { %v2432_v0 = vpop.f32.mrf.mxu0  ;;  %v2519_v2 = vpop.f32.mrf.mxu1 }
 0x2f1   : > { %v2543_v55 = vsel %vm2179_vm9, %v2438_v57, -inf  ;;  %v2549_v63 = vsel %vm2179_vm9, %v2525_v60, -inf  ;;  %v5347_v1 = vadd.f32 %v2432_v0, %v2177_v44  ;;  %v5349_v4 = vadd.f32 %v2519_v2, %v2177_v44 }
 0x2f2   : > { %2535 = vmax.xlane.f32.xlu0 %v2534_v58 }
 0x2f3   : > { %v2540_v5 = vsel %vm2179_vm9, %v5347_v1, -inf  ;;  %v2546_v35 = vsel %vm2179_vm9, %v5349_v4, -inf }
 0x2f6   : > { %2544 = vmax.xlane.f32.xlu0 %v2543_v55 }
 0x2fa   : > { %2550 = vmax.xlane.f32.xlu0 %v2549_v63 }
 0x2fb   : > { %1623 = vrot.lane.b32.xlu1 %v1610_v62, %s4678_s21 }
 0x2ff   : > { %1629 = vrot.lane.b32.xlu1 %v1610_v62, %s4676_s12 }
 0x310   : > { %1617 = vrot.lane.b32.xlu0 %v1610_v62, %s4677_s26 }
 0x323   : > { %2541 = vmax.xlane.f32.xlu1 %v2540_v5 }
 0x327   : > { %2547 = vmax.xlane.f32.xlu1 %v2546_v35 }
 0x373   : > { %v2539_v36 = vpop.xlane.xlu0 %2538  ;;  %v2533_v39 = vpop.xlane.xlu1 %2532 }
 0x374   : > { %v2555_v40 = vsub.f32 %v2351_v46, %v2539_v36  ;;  %v2553_v6 = vsub.f32 %v2264_v45, %v2533_v39 }
 0x376   : > { %v2562_v8 = vmul.f32 1.442695, %v2553_v6  ;;  %v2566_v9 = vmul.f32 1.442695, %v2555_v40 }
 0x377   : > { %v2530_v11 = vpop.xlane.xlu0 %2529  ;;  %v1624_v16 = vpop.permute.xlu1 %1623 }
 0x378   : > { %v2552_v12 = vsub.f32 %v2259_v49, %v2530_v11  ;;  %4379 = vpow2.f32 %v2562_v8  ;;  %v1701_v18 = vcombine.low %v1610_v62, %v1624_v16  ;;  %v1702_v25 = vcombine.high %v1610_v62, %v1624_v16 }
 0x379   : > { %4381 = vpow2.f32 %v2566_v9 }
 0x37a   : > { %v2560_v13 = vmul.f32 1.442695, %v2552_v12  ;;  %v1709_v48 = vrot.slane %v1701_v18, %v5178_v3  ;;  %v1716_v33 = vrot.slane %v1702_v25, %v5178_v3 }
 0x37b   : > { %v2536_v14 = vpop.xlane.xlu0 %2535  ;;  %v1630_v27 = vpop.permute.xlu1 %1629 }
 0x37c   : > { %4383 = vpow2.f32 %v2560_v13  ;;  %v2554_v19 = vsub.f32 %v2346_v53, %v2536_v14 }
 0x37e   : > { %v2564_v20 = vmul.f32 1.442695, %v2554_v19 }
 0x37f   : > { %v2545_v21 = vpop.xlane.xlu0 %2544 }
 0x380   : > { %4385 = vpow2.f32 %v2564_v20  ;;  %v2557_v15 = vsub.f32 %v2438_v57, %v2545_v21  ;;  %v1605_v20 = vadd.f32 %v5340_v61, %v5328_v38 }
 0x382   : > { %v2570_v22 = vmul.f32 1.442695, %v2557_v15 }
 0x383   : > { %v2551_v23 = vpop.xlane.xlu0 %2550 }
 0x384   : > { %4387 = vpow2.f32 %v2570_v22  ;;  %v2559_v17 = vsub.f32 %v2525_v60, %v2551_v23 }
 0x385   : > { %v5355_v24 = vpop.eup %4379 }
 0x386   : > { %v2574_v26 = vmul.f32 1.442695, %v2559_v17  ;;  %v2579_v28 = vsel %vm2179_vm9, %v5355_v24, 0.0  ;;  %v5359_v30 = vpop.eup %4381 }
 0x387   : > { %v1618_v29 = vpop.permute.xlu0 %1617  ;;  %2580 = vadd.xlane.f32.xlu0 %v2579_v28  ;;  %v2585_v42 = vsel %vm2179_vm9, %v5359_v30, 0.0 }
 0x388   : > { %4389 = vpow2.f32 %v2574_v26  ;;  %v1717_v31 = vcombine.low %v1618_v29, %v1630_v27  ;;  %v1718_v7 = vcombine.high %v1618_v29, %v1630_v27 }
 0x389   : > { %v5361_v32 = vpop.eup %4383 }
 0x38a   : > { %v1725_v34 = vrot.slane %v1717_v31, %v5178_v3  ;;  %v1732_v37 = vrot.slane %v1718_v7, %v5178_v3  ;;  %v2576_v41 = vsel %vm2179_vm9, %v5361_v32, 0.0 }
 0x38b   : > { %2577 = vadd.xlane.f32.xlu1 %v2576_v41  ;;  %2586 = vadd.xlane.f32.xlu0 %v2585_v42 }
 0x38c   : > { %v1733_v43 = vcombine.low %v1709_v48, %v1725_v34  ;;  %v1734_v44 = vcombine.high %v1709_v48, %v1725_v34  ;;  %v1749_v45 = vcombine.low %v1716_v33, %v1732_v37  ;;  %v1750_v46 = vcombine.high %v1716_v33, %v1732_v37 }
 0x38d   : > { %v5371_v47 = vpop.eup %4385 }
 0x38e   : > { %v1741_v49 = vrot.slane %v1733_v43, %v5182_v10  ;;  %v1748_v50 = vrot.slane %v1734_v44, %v5182_v10  ;;  %v1757_v51 = vrot.slane %v1749_v45, %v5182_v10  ;;  %v1764_v52 = vrot.slane %v1750_v46, %v5182_v10 }
 0x38f   : > { %v2582_v53 = vsel %vm2179_vm9, %v5371_v47, 0.0 }
 0x390   : > { %v2109_v54 = vcombine.low %v1741_v49, %v1748_v50  ;;  %v3893_v56 = vcombine.high %v1741_v49, %v1748_v50  ;;  %v2125_v57 = vcombine.low %v1757_v51, %v1764_v52  ;;  %v3894_v58 = vcombine.high %v1757_v51, %v1764_v52  ;;  %2583 = vadd.xlane.f32.xlu1 %v2582_v53 }
 0x391   : > { %v5379_v59 = vpop.eup %4387 }
 0x392   : > { %v2591_v60 = vsel %vm2179_vm9, %v5379_v59, 0.0  ;;  %v2116_v55 = vrot.slane %v2109_v54, %v5178_v3  ;;  %v2124_v62 = vrot.slane %v3893_v56, %v5178_v3  ;;  %v2132_v63 = vrot.slane %v2125_v57, %v5178_v3 }
 0x393   : > { %2592 = vadd.xlane.f32.xlu0 %v2591_v60  ;;  %v2140_v0 = vrot.slane %v3894_v58, %v5178_v3 }
 0x394   : > { %v2141_v2 = vcombine.low %v2116_v55, %v2124_v62  ;;  %v2142_v5 = vcombine.high %v2116_v55, %v2124_v62 }
 0x395   : > { %v5387_v35 = vpop.eup %4389  ;;  %v2157_v36 = vcombine.low %v2132_v63, %v2140_v0  ;;  %v2158_v39 = vcombine.high %v2132_v63, %v2140_v0 }
 0x396   : > { %v2597_v40 = vsel %vm2179_vm9, %v5387_v35, 0.0  ;;  %v2149_v6 = vrot.slane %v2141_v2, %v5182_v10  ;;  %v2156_v8 = vrot.slane %v2142_v5, %v5182_v10 }
 0x397   : > { %2598 = vadd.xlane.f32.xlu0 %v2597_v40  ;;  %v2165_v9 = vrot.slane %v2157_v36, %v5182_v10  ;;  %v2172_v11 = vrot.slane %v2158_v39, %v5182_v10 }
 0x399   : > { %v2173_v12 = vcombine.low %v2149_v6, %v2165_v9  ;;  %v2174_v13 = vcombine.high %v2149_v6, %v2165_v9  ;;  %v5395_v14 = vcombine.low %v2156_v8, %v2172_v11  ;;  %v5397_v19 = vcombine.high %v2156_v8, %v2172_v11 }
 0x39b   : > { %4140 = vmatprep.subr.mxu0 %v2173_v12  ;;  %4147 = vmatprep.subr.mxu1 %v2174_v13 }
 0x39c   : > { %4141 = vmatpush3.msra.mxu0 %v2173_v12  ;;  %4148 = vmatpush3.msra.mxu1 %v2174_v13 }
 0x3a1   : > { %1615 = vrot.lane.b32.xlu1 %v1605_v20, %s4677_s26 }
 0x3a5   : > { %1621 = vrot.lane.b32.xlu1 %v1605_v20, %s4678_s21 }
 0x3ac   : > { %v2542_v21 = vpop.xlane.xlu1 %2541 }
 0x3ad   : > { %v2556_v15 = vsub.f32 %v5347_v1, %v2542_v21 }
 0x3af   : > { %v2568_v22 = vmul.f32 1.442695, %v2556_v15 }
 0x3b0   : > { %v2548_v16 = vpop.xlane.xlu1 %2547 }
 0x3b1   : > { %v2558_v23 = vsub.f32 %v5349_v4, %v2548_v16  ;;  %4391 = vpow2.f32 %v2568_v22 }
 0x3b3   : > { %v2572_v17 = vmul.f32 1.442695, %v2558_v23 }
 0x3b5   : > { %4393 = vpow2.f32 %v2572_v17 }
 0x3be   : > { %v5405_v18 = vpop.eup %4391 }
 0x3bf   : > { %v2588_v25 = vsel %vm2179_vm9, %v5405_v18, 0.0 }
 0x3c2   : > { %v5409_v38 = vpop.eup %4393 }
 0x3c3   : > { %v2594_v61 = vsel %vm2179_vm9, %v5409_v38, 0.0 }
 0x3c9   : > { %2589 = vadd.xlane.f32.xlu1 %v2588_v25 }
 0x3cd   : > { %2595 = vadd.xlane.f32.xlu1 %v2594_v61 }
 0x3de   : > { %1627 = vrot.lane.b32.xlu1 %v1605_v20, %s4676_s12 }
 0x410   : > { %v2581_v48 = vpop.xlane.xlu0 %2580 }
 0x414   : > { %v2578_v1 = vpop.xlane.xlu1 %2577  ;;  %v2587_v34 = vpop.xlane.xlu0 %2586 }
 0x415   : > { %4395 = vrcp.f32 %v2578_v1 }
 0x419   : > { %v2584_v4 = vpop.xlane.xlu1 %2583 }
 0x41a   : > { %4397 = vrcp.f32 %v2584_v4 }
 0x41b   : > { %4399 = vrcp.f32 %v2581_v48 }
 0x41c   : > { %v2593_v41 = vpop.xlane.xlu0 %2592  ;;  %4401 = vrcp.f32 %v2587_v34  ;;  %v1016_v34 = vld [vmem:[%s5020_s25 + $0x30] sm:$0xff] }
 0x41d   : > { %v1616_v31 = vpop.permute.xlu1 %1615  ;;  %4403 = vrcp.f32 %v2593_v41 }
 0x420   : > { %v2599_v51 = vpop.xlane.xlu0 %2598 }
 0x421   : > { %v1622_v7 = vpop.permute.xlu1 %1621 }
 0x422   : > { %v4396_v26 = vpop.eup %4395  ;;  %v1633_v42 = vcombine.low %v1605_v20, %v1622_v7  ;;  %v1634_v43 = vcombine.high %v1605_v20, %v1622_v7 }
 0x423   : > { %v2608_v27 = vmul.f32 %v4396_v26, %v5361_v32 }
 0x424   : > { %v1641_v46 = vrot.slane %v1633_v42, %v5178_v3 }
 0x425   : > { %4144 = vmatprep.mubr.msk.f32.mxu0 %vm2179_vm9, %v2608_v27 }
 0x427   : > { %v4398_v28 = vpop.eup %4397 }
 0x428   : > { %v2610_v29 = vmul.f32 %v4398_v28, %v5371_v47  ;;  %v1648_v47 = vrot.slane %v1634_v43, %v5178_v3  ;;  %v4400_v6 = vpop.eup %4399  ;;  %v1012_v28 = vld [vmem:[%s5020_s25 + $0x10] sm:$0xff] }
 0x429   : > { %v4402_v11 = vpop.eup %4401  ;;  %v2609_v17 = vmul.f32 %v4400_v6, %v5355_v24 }
 0x42a   : > { %4151 = vmatprep.mubr.msk.f32.mxu1 %vm2179_vm9, %v2610_v29  ;;  %v4404_v12 = vpop.eup %4403 }
 0x452   : > { %v2590_v33 = vpop.xlane.xlu1 %2589 }
 0x453   : > { %4405 = vrcp.f32 %v2590_v33  ;;  %v1014_v33 = vld [vmem:[%s5020_s25 + $0x20] sm:$0xff] }
 0x456   : > { %v2596_v37 = vpop.xlane.xlu1 %2595 }
 0x457   : > { %4407 = vrcp.f32 %v2596_v37 }
 0x458   : > { %4409 = vrcp.f32 %v2599_v51 }
 0x45a   : > { %v1628_v44 = vpop.permute.xlu1 %1627 }
 0x45b   : > { %v1649_v32 = vcombine.low %v1616_v31, %v1628_v44  ;;  %v1650_v45 = vcombine.high %v1616_v31, %v1628_v44 }
 0x45d   : > { %v1657_v49 = vrot.slane %v1649_v32, %v5178_v3  ;;  %v1664_v50 = vrot.slane %v1650_v45, %v5178_v3 }
 0x45f   : > { %v1665_v52 = vcombine.low %v1641_v46, %v1657_v49  ;;  %v1666_v53 = vcombine.high %v1641_v46, %v1657_v49  ;;  %v1681_v54 = vcombine.low %v1648_v47, %v1664_v50  ;;  %v1682_v56 = vcombine.high %v1648_v47, %v1664_v50 }
 0x460   : > { %v4406_v16 = vpop.eup %4405 }
 0x461   : > { %v1673_v57 = vrot.slane %v1665_v52, %v5182_v10  ;;  %v1680_v58 = vrot.slane %v1666_v53, %v5182_v10  ;;  %v1689_v60 = vrot.slane %v1681_v54, %v5182_v10  ;;  %v1696_v55 = vrot.slane %v1682_v56, %v5182_v10 }
 0x462   : > { %v2612_v26 = vmul.f32 %v4406_v16, %v5405_v18  ;;  %v2613_v18 = vmul.f32 %v4404_v12, %v5379_v59  ;;  %v1015_v59 = vld [vmem:[%s5020_s25 + $0x28] sm:$0xff]  ;;  %v4420_v12 = vld [vmem:[%s5100_s17] sm:$0xff] }
 0x463   : > { %v2041_v62 = vcombine.low %v1673_v57, %v1680_v58  ;;  %v3891_v63 = vcombine.high %v1673_v57, %v1680_v58  ;;  %v2057_v0 = vcombine.low %v1689_v60, %v1696_v55  ;;  %v3892_v2 = vcombine.high %v1689_v60, %v1696_v55 }
 0x464   : > { %v4408_v25 = vpop.eup %4407 }
 0x465   : > { %v2048_v5 = vrot.slane %v2041_v62, %v5178_v3  ;;  %v2056_v36 = vrot.slane %v3891_v63, %v5178_v3  ;;  %v2064_v39 = vrot.slane %v2057_v0, %v5178_v3  ;;  %v2072_v40 = vrot.slane %v3892_v2, %v5178_v3  ;;  %v4410_v4 = vpop.eup %4409  ;;  %v3927_v62 = vld [vmem:[%s5735_s30] ss:$0 sm:$0xff]  ;;  %s3561_s30 = sshll.u32 %s5100_s17, 4  ;;  %s5564_s30 = int_to_ptr.vmem [resolvable:$true] %s3561_s30 }
 0x466   : > { %v2611_v3 = vmul.f32 %v4402_v11, %v5359_v30  ;;  %v2614_v24 = vmul.f32 %v4408_v25, %v5409_v38  ;;  %v2615_v27 = vmul.f32 %v4410_v4, %v5387_v35  ;;  %v1010_v38 = vld [vmem:[%s5020_s25] sm:$0xff]  ;;  %v1017_v35 = vld [vmem:[%s5020_s25 + $0x38] sm:$0xff] }
 0x467   : > { %v2073_v8 = vcombine.low %v2048_v5, %v2056_v36  ;;  %v2089_v9 = vcombine.low %v2064_v39, %v2072_v40  ;;  %v2074_v21 = vcombine.high %v2048_v5, %v2056_v36  ;;  %v2090_v15 = vcombine.high %v2064_v39, %v2072_v40  ;;  %v1028_v4 = vld [vmem:[%s5736_s28 + $0x38] sm:$0xff] }
 0x469   : > { %v2081_v13 = vrot.slane %v2073_v8, %v5182_v10  ;;  %v2097_v20 = vrot.slane %v2089_v9, %v5182_v10  ;;  %v2088_v61 = vrot.slane %v2074_v21, %v5182_v10  ;;  %v2104_v1 = vrot.slane %v2090_v15, %v5182_v10  ;;  %v4419_v8 = vld [vmem:[%s5100_s17 + $0x8] sm:$0xff] }
 0x46b   : > { %v2105_v22 = vcombine.low %v2081_v13, %v2097_v20  ;;  %v2106_v23 = vcombine.high %v2081_v13, %v2097_v20  ;;  %v2107_v10 = vcombine.low %v2088_v61, %v2104_v1  ;;  %v2108_v30 = vcombine.high %v2088_v61, %v2104_v1 }
 0x46d   : > { %4142 = vmatprep.subr.mxu0 %v2105_v22  ;;  %4149 = vmatprep.subr.mxu1 %v2106_v23 }
 0x46e   : > { %4143 = vmatpush3.msra.mxu0 %v2105_v22  ;;  %4150 = vmatpush3.msra.mxu1 %v2106_v23 }
 0x46f   : > { %4145 = vmatmul.mubr.msk.f32.vlgmr.msra.gmra.mxu0 %vm2179_vm9, %v2609_v17  ;;  %4152 = vmatmul.mubr.msk.f32.vlgmr.msra.gmra.mxu1 %vm2179_vm9, %v2611_v3 }
 0x470   : > { %4154 = vmatprep.subr.mxu0 %v5395_v14  ;;  %4161 = vmatprep.subr.mxu1 %v5397_v19 }
 0x471   : > { %4155 = vmatpush3.msra.mxu0 %v5395_v14  ;;  %4158 = vmatprep.mubr.msk.f32.mxu0 %vm2179_vm9, %v2612_v26  ;;  %v1011_v14 = vld [vmem:[%s5020_s25 + $0x8] sm:$0xff]  ;;  %v1027_v26 = vld [vmem:[%s5736_s28 + $0x30] sm:$0xff] }
 0x472   : > { %4162 = vmatpush3.msra.mxu1 %v5397_v19  ;;  %4165 = vmatprep.mubr.msk.f32.mxu1 %vm2179_vm9, %v2614_v24  ;;  %v1013_v19 = vld [vmem:[%s5020_s25 + $0x18] sm:$0xff] }
 0x473   : > { %4156 = vmatprep.subr.mxu0 %v2107_v10  ;;  %4163 = vmatprep.subr.mxu1 %v2108_v30  ;;  %v1026_v24 = vld [vmem:[%s5736_s28 + $0x28] sm:$0xff] }
 0x474   : > { %4157 = vmatpush3.msra.mxu0 %v2107_v10  ;;  %4164 = vmatpush3.msra.mxu1 %v2108_v30  ;;  %v1025_v10 = vld [vmem:[%s5736_s28 + $0x20] sm:$0xff]  ;;  %v1024_v30 = vld [vmem:[%s5736_s28 + $0x18] sm:$0xff] }
 0x475   : > { %4159 = vmatmul.mubr.msk.f32.vlgmr.msra.gmra.mxu0 %vm2179_vm9, %v2613_v18  ;;  %4166 = vmatmul.mubr.msk.f32.vlgmr.msra.gmra.mxu1 %vm2179_vm9, %v2615_v27  ;;  %v1023_v18 = vld [vmem:[%s5736_s28 + $0x10] sm:$0xff]  ;;  %v1022_v27 = vld [vmem:[%s5736_s28 + $0x8] sm:$0xff] }
 0x476   : > { %4168 = vmatprep.subr.mxu0 %v1011_v14  ;;  %4175 = vmatprep.subr.mxu1 %v1013_v19 }
 0x477   : > { %4169 = vmatpush3.msra.mxu0 %v1011_v14  ;;  %4176 = vmatpush3.msra.mxu1 %v1013_v19  ;;  %v1021_v14 = vld [vmem:[%s5736_s28] sm:$0xff]  ;;  %v1045_v19 = vld [vmem:[%s5084_s22 + $0x78] sm:$0xff] }
 0x478   : > { %4170 = vmatprep.subr.mxu0 %v1010_v38  ;;  %4177 = vmatprep.subr.mxu1 %v1012_v28 }
 0x479   : > { %4171 = vmatpush3.msra.mxu0 %v1010_v38  ;;  %4178 = vmatpush3.msra.mxu1 %v1012_v28  ;;  %v1044_v38 = vld [vmem:[%s5084_s22 + $0x70] sm:$0xff]  ;;  %v1043_v28 = vld [vmem:[%s5084_s22 + $0x68] sm:$0xff] }
 0x47a   : > { %4182 = vmatprep.subr.mxu0 %v1015_v59  ;;  %4189 = vmatprep.subr.mxu1 %v1017_v35 }
 0x52f   : > { %v4146_v29 = vpop.f32.mrf.mxu0  ;;  %v4153_v31 = vpop.f32.mrf.mxu1 }
 0x531   : > { %v2688_v7 = vpop.f32.mrf.mxu0  ;;  %v2769_v48 = vpop.f32.mrf.mxu1 }
 0x532   : > { %4172 = vmatprep.mubr.msk.f32.mxu0 %vm2179_vm9, %v2688_v7  ;;  %4179 = vmatprep.mubr.msk.f32.mxu1 %vm2179_vm9, %v2769_v48  ;;  %v1038_v7 = vld [vmem:[%s5084_s22 + $0x40] sm:$0xff]  ;;  %v1037_v48 = vld [vmem:[%s5084_s22 + $0x38] sm:$0xff] }
 0x533   : > { %4173 = vmatmul.mubr.msk.f32.vlgmr.msra.gmra.mxu0 %vm2179_vm9, %v4146_v29  ;;  %4180 = vmatmul.mubr.msk.f32.vlgmr.msra.gmra.mxu1 %vm2179_vm9, %v4153_v31  ;;  %v1040_v29 = vld [vmem:[%s5084_s22 + $0x50] sm:$0xff]  ;;  %v1039_v31 = vld [vmem:[%s5084_s22 + $0x48] sm:$0xff] }
 0x534   : > { %4183 = vmatpush3.msra.mxu0 %v1015_v59  ;;  %4190 = vmatpush3.msra.mxu1 %v1017_v35  ;;  %v1042_v59 = vld [vmem:[%s5084_s22 + $0x60] sm:$0xff]  ;;  %v1041_v35 = vld [vmem:[%s5084_s22 + $0x58] sm:$0xff] }
 0x535   : > { %v4160_v37 = vpop.f32.mrf.mxu0  ;;  %v4167_v41 = vpop.f32.mrf.mxu1  ;;  %4184 = vmatprep.subr.mxu0 %v1014_v33  ;;  %4191 = vmatprep.subr.mxu1 %v1016_v34 }
 0x536   : > { %4185 = vmatpush3.msra.mxu0 %v1014_v33  ;;  %4192 = vmatpush3.msra.mxu1 %v1016_v34  ;;  %v1036_v33 = vld [vmem:[%s5084_s22 + $0x30] sm:$0xff]  ;;  %v1035_v34 = vld [vmem:[%s5084_s22 + $0x28] sm:$0xff] }
 0x537   : > { %v2850_v42 = vpop.f32.mrf.mxu0  ;;  %v2931_v43 = vpop.f32.mrf.mxu1  ;;  %4196 = vmatprep.subr.mxu0 %v1028_v4  ;;  %4215 = vmatprep.subr.mxu1 %v1045_v19 }
 0x538   : > { %4186 = vmatprep.mubr.msk.f32.mxu0 %vm2179_vm9, %v2850_v42  ;;  %4193 = vmatprep.mubr.msk.f32.mxu1 %vm2179_vm9, %v2931_v43 }
 0x539   : > { %4187 = vmatmul.mubr.msk.f32.vlgmr.msra.gmra.mxu0 %vm2179_vm9, %v4160_v37  ;;  %4194 = vmatmul.mubr.msk.f32.vlgmr.msra.gmra.mxu1 %vm2179_vm9, %v4167_v41  ;;  %v1034_v37 = vld [vmem:[%s5084_s22 + $0x20] sm:$0xff] }
 0x53a   : > { %4197 = vmatpush3.msra.mxu0 %v1028_v4  ;;  %4216 = vmatpush3.msra.mxu1 %v1045_v19 }
 0x53b   : > { %4198 = vmatprep.subr.mxu0 %v1027_v26  ;;  %4217 = vmatprep.subr.mxu1 %v1044_v38 }
 0x53c   : > { %4199 = vmatpush3.msra.mxu0 %v1027_v26  ;;  %4218 = vmatpush3.msra.mxu1 %v1044_v38  ;;  %v3934_v38 = vld [vmem:[%s933_s29] ss:$0 sm:$0xff] }
 0x53d   : > { %4200 = vmatprep.subr.mxu0 %v1026_v24  ;;  %4219 = vmatprep.subr.mxu1 %v1043_v28 }
 0x53e   : > { %4201 = vmatpush3.msra.mxu0 %v1026_v24  ;;  %4220 = vmatpush3.msra.mxu1 %v1043_v28 }
 0x53f   : > { %4202 = vmatprep.subr.mxu0 %v1025_v10  ;;  %4221 = vmatprep.subr.mxu1 %v1042_v59 }
 0x540   : > { %4203 = vmatpush3.msra.mxu0 %v1025_v10  ;;  %4222 = vmatpush3.msra.mxu1 %v1042_v59  ;;  %v3935_v59 = vld [vmem:[%s936_s27] ss:$0 sm:$0xff]  ;;  %s4533_s27 = scalar_lea.vmem %s5564_s30, 256 }
 0x541   : > { %4204 = vmatprep.subr.mxu0 %v1024_v30  ;;  %4223 = vmatprep.subr.mxu1 %v1041_v35  ;;  %p4534_p11 = scmp.ne.s32.totalorder %s5564_s30, %s4533_s27 }
 0x542   : > { %4205 = vmatpush3.msra.mxu0 %v1024_v30  ;;  %4224 = vmatpush3.msra.mxu1 %v1041_v35 }
 0x543   : > { %4206 = vmatprep.subr.mxu0 %v1023_v18  ;;  %4225 = vmatprep.subr.mxu1 %v1040_v29  ;;  %p4535_p6 = pnand %p4534_p11, %p4902_p7 }
 0x544   : > { %4207 = vmatpush3.msra.mxu0 %v1023_v18  ;;  %4226 = vmatpush3.msra.mxu1 %v1040_v29 }
 0x545   : > { %4208 = vmatprep.subr.mxu0 %v1022_v27  ;;  %4227 = vmatprep.subr.mxu1 %v1039_v31  ;;  %p4536_p9 = pneg %p4535_p6 }
 0x546   : > { %4209 = vmatpush3.msra.mxu0 %v1022_v27  ;;  %4228 = vmatpush3.msra.mxu1 %v1039_v31 }
 0x547   : > { %4210 = vmatprep.subr.mxu0 %v1021_v14  ;;  %4229 = vmatprep.subr.mxu1 %v1038_v7 }
 0x548   : > { %4211 = vmatpush3.msra.mxu0 %v1021_v14  ;;  %4230 = vmatpush3.msra.mxu1 %v1038_v7 }
 0x549   : > { %4231 = vmatprep.subr.mxu1 %v1037_v48 }
 0x54a   : > { %4232 = vmatpush3.msra.mxu1 %v1037_v48 }
 0x54b   : > { %4233 = vmatprep.subr.mxu1 %v1036_v33 }
 0x54c   : > { %4234 = vmatpush3.msra.mxu1 %v1036_v33 }
 0x54d   : > { %4235 = vmatprep.subr.mxu1 %v1035_v34 }
 0x54e   : > { %4236 = vmatpush3.msra.mxu1 %v1035_v34 }
 0x54f   : > { %4237 = vmatprep.subr.mxu1 %v1034_v37 }
 0x550   : > { %4238 = vmatpush3.msra.mxu1 %v1034_v37 }
 0x5f3   : > { %v4174_v44 = vpop.f32.mrf.mxu0  ;;  %v4181_v32 = vpop.f32.mrf.mxu1 }
 0x5f4   : > { %v3271_v47 = vsel %vm1057_vm8, %v4174_v44, 0.0  ;;  %v3272_v49 = vsel %vm1057_vm8, %v4181_v32, 0.0 }
 0x5f5   : > { %v3012_v45 = vpop.f32.mrf.mxu0  ;;  %v3093_v46 = vpop.f32.mrf.mxu1  ;;  %v3273_v52 = vadd.f32 %v3272_v49, %v3271_v47  ;;  %v3928_v47 = vld [vmem:[%s5738_s11] ss:$0 sm:$0xff]  ;;  %s4537_s11 = sshll.u32 %s4681_s13, 4  ;;  %s4538_s11 = int_to_ptr.vmem [resolvable:$false] %s4537_s11 }
 0x5f6   : > { %v3264_v50 = vsel %vm1057_vm8, %v3012_v45, 0.0  ;;  %v3265_v51 = vsel %vm1057_vm8, %v3093_v46, 0.0  ;;  %s4539_s1 = scalar_lea.vmem %s4538_s11, 512  ;;  %p4540_p4 = scmp.lt.s32.totalorder %s5564_s30, %s4538_s11 }
 0x5f7   : > { %v3266_v57 = vadd.f32 %v3265_v51, %v3264_v50  ;;  %v3929_v50 = vld [vmem:[%s5740_s3] ss:$0 sm:$0xff]  ;;  %p4541_p2 = scmp.lt.s32.totalorder %s4539_s1, %s4533_s27 }
 0x5f9   : > { %v4188_v53 = vpop.f32.mrf.mxu0  ;;  %v4195_v54 = vpop.f32.mrf.mxu1  ;;  %p4542_p12 = por %p4541_p2, %p4540_p4 }
 0x5fa   : > { %v3274_v56 = vsel %vm1057_vm8, %v4188_v53, 0.0  ;;  %v3276_v63 = vsel %vm1057_vm8, %v4195_v54, 0.0 }
 0x5fb   : > { %v3275_v58 = vadd.f32 %v3274_v56, %v3273_v52  ;;  %v3174_v60 = vpop.f32.mrf.mxu0  ;;  %v3255_v55 = vpop.f32.mrf.mxu1  ;;  %p4543_p0 = pnand %p4542_p12, %p4536_p9 }
 0x5fc   : > { %v3267_v0 = vsel %vm1057_vm8, %v3174_v60, 0.0  ;;  %v3269_v36 = vsel %vm1057_vm8, %v3255_v55, 0.0  ;;  %v1032_v60 = vld [vmem:[%s5084_s22 + $0x10] sm:$0xff]  ;;  %v1031_v55 = vld [vmem:[%s5084_s22 + $0x8] sm:$0xff] }
 0x5fd   : > { %v3277_v2 = vadd.f32 %v3276_v63, %v3275_v58  ;;  %v3268_v5 = vadd.f32 %v3267_v0, %v3266_v57  ;;  %v1033_v58 = vld [vmem:[%s5084_s22 + $0x18] sm:$0xff]  ;;  %v3930_v63 = vld [vmem:[%s922_s4] ss:$0 sm:$0xff] }
 0x5fe   : > { %4239 = vmatprep.subr.mxu1 %v1033_v58 }
 0x5ff   : > { %v3285_v39 = vadd.f32 %v3927_v62, %v3277_v2  ;;  %v3270_v40 = vadd.f32 %v3269_v36, %v3268_v5  ;;  %4240 = vmatpush3.msra.mxu1 %v1033_v58 }
 0x600   : > { %4241 = vmatprep.subr.mxu1 %v1032_v60 }
 0x601   : > { %v3284_v6 = vadd.f32 %v3927_v62, %v3270_v40  ;;  %v3287_v9 = vadd.f32 %v4419_v8, %v3285_v39  ;;  %4242 = vmatpush3.msra.mxu1 %v1032_v60  ;;  %v1030_v62 = vld [vmem:[%s5084_s22] sm:$0xff] }
 0x602   : > { %4243 = vmatprep.subr.mxu1 %v1031_v55  ;;  %v3933_v8 = vld [vmem:[%s930_s0] ss:$0 sm:$0xff]  ;;  %s5743_s0 = sld [smem:[#allocation22_spill]] }
 0x603   : > { %v3291_v11 = vsel %vm1057_vm8, %v3287_v9, 0.0  ;;  %v3286_v13 = vadd.f32 %v4420_v12, %v3284_v6  ;;  %4244 = vmatpush3.msra.mxu1 %v1031_v55 }
 0x604   : > { %3292 = vadd.xlane.f32.xlu0 %v3291_v11  ;;  %4245 = vmatprep.subr.mxu1 %v1030_v62 }
 0x605   : > { %v3288_v20 = vsel %vm1057_vm8, %v3286_v13, 0.0  ;;  %4246 = vmatpush3.msra.mxu1 %v1030_v62 }
 0x606   : > { %3289 = vadd.xlane.f32.xlu1 %v3288_v20 }
 0x608   : > { %s3948_s18 = sshll.u32 %s5743_s0, 8 }
 0x609   : > { %s5562_s29 = scalar_lea.hbm %s5747_s16, %s3948_s18 }
 0x68d   : > { %v3293_v21 = vpop.xlane.xlu0 %3292 }
 0x68e   : > { %v3296_v15 = vmul.f32 0.015625, %v3293_v21 }
 0x68f   : > { %v3290_v16 = vpop.xlane.xlu1 %3289 }
 0x690   : > { %v3295_v22 = vmul.f32 0.015625, %v3290_v16  ;;  %v5483_v23 = vsub.f32 %v3287_v9, %v3296_v15 }
 0x692   : > { %v5485_v17 = vsub.f32 %v3286_v13, %v3295_v22  ;;  %v3300_v61 = vmul.f32 %v5483_v23, %v5483_v23 }
 0x694   : > { %v3299_v25 = vmul.f32 %v5485_v17, %v5485_v17  ;;  %v3304_v1 = vsel %vm1057_vm8, %v3300_v61, 0.0 }
 0x696   : > { %v3301_v3 = vsel %vm1057_vm8, %v3299_v25, 0.0 }
 0x697   : > { %3302 = vadd.xlane.f32.xlu0 %v3301_v3 }
 0x69b   : > { %3305 = vadd.xlane.f32.xlu0 %v3304_v1 }
 0x720   : > { %v3303_v41 = vpop.xlane.xlu0 %3302 }
 0x721   : > { %v3307_v42 = vmul.f32 0.015625, %v3303_v41 }
 0x723   : > { %v3309_v43 = vadd.f32 1e-05, %v3307_v42 }
 0x724   : > { %v3306_v44 = vpop.xlane.xlu0 %3305 }
 0x725   : > { %4411 = vrsqrt.f32 %v3309_v43  ;;  %v3308_v32 = vmul.f32 0.015625, %v3306_v44 }
 0x727   : > { %v3310_v45 = vadd.f32 1e-05, %v3308_v32 }
 0x729   : > { %4413 = vrsqrt.f32 %v3310_v45 }
 0x732   : > { %v4412_v46 = vpop.eup %4411 }
 0x733   : > { %v3313_v49 = vmul.f32 %v4412_v46, %v5485_v17 }
 0x735   : > { %v3321_v51 = vmul.f32 %v3928_v47, %v3313_v49 }
 0x736   : > { %v4414_v52 = vpop.eup %4413 }
 0x737   : > { %v3314_v53 = vmul.f32 %v4414_v52, %v5483_v23  ;;  %v3329_v54 = vadd.f32 %v3929_v50, %v3321_v51 }
 0x739   : > { %v3322_v56 = vmul.f32 %v3928_v47, %v3314_v53  ;;  %4212 = vmatprep.mubr.msk.f32.mxu0 %vm1057_vm8, %v3329_v54 }
 0x73b   : > { %v3330_v57 = vadd.f32 %v3929_v50, %v3322_v56 }
 0x73d   : > { %4213 = vmatmul.mubr.msk.f32.vlgmr.msra.gmra.mxu0 %vm1057_vm8, %v3330_v57 }
 0x7fd   : > { %v4214_v0 = vpop.f32.mrf.mxu0 }
 0x7fe   : > { %v3415_v2 = vadd.f32 %v4214_v0, %v3930_v63 }
 0x7ff   : > { %v3409_v5 = vpop.f32.mrf.mxu0 }
 0x800   : > { %v3410_v36 = vadd.f32 %v3930_v63, %v3409_v5  ;;  %v3419_v40 = vmax.f32 %v3415_v2, 0.0 }
 0x802   : > { %v3418_v39 = vmax.f32 %v3410_v36, 0.0 }
 0x804   : > { %4247 = vmatprep.mubr.f32.mxu1 %v3418_v39 }
 0x805   : > { %4248 = vmatmul.mubr.f32.vlgmr.msra.gmra.mxu1 %v3419_v40 }
 0x8c5   : > { %v4249_v6 = vpop.f32.mrf.mxu1 }
 0x8c6   : > { %v3498_v11 = vadd.f32 %v4249_v6, %v3933_v8 }
 0x8c7   : > { %v3492_v9 = vpop.f32.mrf.mxu1 }
 0x8c8   : > { %v3493_v12 = vadd.f32 %v3933_v8, %v3492_v9  ;;  %v3502_v21 = vadd.f32 %v3498_v11, %v3330_v57 }
 0x8ca   : > { %v3501_v13 = vadd.f32 %v3493_v12, %v3329_v54  ;;  %v3506_v15 = vsel %vm1057_vm8, %v3502_v21, 0.0 }
 0x8cc   : > { %v3503_v20 = vsel %vm1057_vm8, %v3501_v13, 0.0 }
 0x8cd   : > { %3504 = vadd.xlane.f32.xlu0 %v3503_v20 }
 0x8d1   : > { %3507 = vadd.xlane.f32.xlu0 %v3506_v15 }
 0x956   : > { %v3505_v16 = vpop.xlane.xlu0 %3504 }
 0x957   : > { %v3509_v22 = vmul.f32 0.015625, %v3505_v16 }
 0x959   : > { %v3511_v23 = vsub.f32 %v3501_v13, %v3509_v22 }
 0x95a   : > { %v3508_v17 = vpop.xlane.xlu0 %3507 }
 0x95b   : > { %v3510_v25 = vmul.f32 0.015625, %v3508_v17  ;;  %v3513_v3 = vmul.f32 %v3511_v23, %v3511_v23 }
 0x95d   : > { %v3512_v61 = vsub.f32 %v3502_v21, %v3510_v25  ;;  %v3515_v1 = vsel %vm1057_vm8, %v3513_v3, 0.0 }
 0x95e   : > { %3516 = vadd.xlane.f32.xlu1 %v3515_v1 }
 0x95f   : > { %v3514_v4 = vmul.f32 %v3512_v61, %v3512_v61 }
 0x961   : > { %v3518_v26 = vsel %vm1057_vm8, %v3514_v4, 0.0 }
 0x962   : > { %3519 = vadd.xlane.f32.xlu0 %v3518_v26 }
 0x9e7   : > { %v3517_v24 = vpop.xlane.xlu1 %3516 }
 0x9e8   : > { %v3521_v10 = vmul.f32 0.015625, %v3517_v24 }
 0x9ea   : > { %v3523_v30 = vadd.f32 1e-05, %v3521_v10 }
 0x9eb   : > { %v3520_v18 = vpop.xlane.xlu0 %3519 }
 0x9ec   : > { %4415 = vrsqrt.f32 %v3523_v30  ;;  %v3522_v27 = vmul.f32 0.015625, %v3520_v18 }
 0x9ee   : > { %v3524_v14 = vadd.f32 1e-05, %v3522_v27 }
 0x9f0   : > { %4417 = vrsqrt.f32 %v3524_v14 }
 0x9f9   : > { %v4416_v19 = vpop.eup %4415 }
 0x9fa   : > { %v3527_v28 = vmul.f32 %v4416_v19, %v3511_v23 }
 0x9fc   : > { %v3535_v35 = vmul.f32 %v3934_v38, %v3527_v28 }
 0x9fd   : > { %v4418_v29 = vpop.eup %4417 }
 0x9fe   : > { %v3528_v31 = vmul.f32 %v4418_v29, %v3512_v61  ;;  %v3543_v7 = vadd.f32 %v3935_v59, %v3535_v35 }
 0xa00   : > { %v3536_v48 = vmul.f32 %v3934_v38, %v3528_v31  ;;  %3545 = vst.msk [vmem:[%s5100_s17] sm:$0xff] %vm1057_vm8, %v3543_v7 }
 0xa02   : > { %v3544_v33 = vadd.f32 %v3935_v59, %v3536_v48 }
 0xa04   : > { %3546 = vst.msk [vmem:[%s5100_s17 + $0x8] sm:$0xff] %vm1057_vm8, %v3544_v33 }
 0xa05   : > { %4546 = shalt.err (!%p4543_p0)
}
 0xa06   : > { %s4547_s17 = scalar_lea.hbm %s5562_s29, 256  ;;  %s4551_s3 = scalar_lea.hbm %s5747_s16, 512 }
 0xa07   : > { %p4548_p5 = scmp.ne.s32.totalorder %s5562_s29, %s4547_s17  ;;  %p4552_p3 = scmp.lt.s32.totalorder %s5562_s29, %s5747_s16 }
 0xa08   : > { %p4553_p13 = scmp.lt.s32.totalorder %s4551_s3, %s4547_s17 }
 0xa09   : > { %p4549_p8 = pnand %p4548_p5, %p4902_p7 }
 0xa0a   : > { %p4554_p11 = por %p4553_p13, %p4552_p3 }
 0xa0b   : > { %p4550_p1 = pneg %p4549_p8 }
 0xa0d   : > { %p4555_p6 = pnand %p4554_p11, %p4550_p1 }
 0xa0f   : > { %4558 = shalt.err (!%p4555_p6)
}
 0xa10   : > { %s4682_s8 = smov 128   ;;  %s4683_s12 = smov 8  }
 0xa11   : > { %4258 = dma.vmem_to_hbm [thread:$0]  (%p4902_p7), %s5564_s30, 256, %s5562_s29, %s3548_s15, %s4682_s8, %s4682_s8, %s4683_s12  }
 0xa12 PF: > { %s5748_s22 = sld [smem:[#allocation25_spill]] }
 0xa13   : > { %s5749_s26 = sld [smem:[#allocation19_spill]] }
 0xa18   : > { %p4278_p9 = scmp.ge.s32.totalorder %s5748_s22, 2 }
 0xa19   : > { %s3576_s4 = sand.u32 1, %s5749_s26  }
 0xa1a   : > { %p4274_p4 = pnand %p4278_p9, %p4909_p10  ;;  %s3577_s21 = scalar_lea.sflag [#allocation5], %s3576_s4 }
 0xa1c   : > { %p4275_p2 = pneg %p4274_p4 }
 0xa1e   : > { %4620 = dma.done.wait (%p4275_p2), %s3577_s21, 256  }
 0xa1f   : > { %4622 = vsyncadd (%p4275_p2), %s3577_s21, 4294967040  ;;  %s40_s2 = sadd.s32 1, %s5748_s22   ;;  %s5751_s27 = sld [smem:[#allocation17_spill]] }
 0xa20   : > { %p37_p12 = scmp.ge.s32.totalorder %s40_s2, 6   ;;  %s5752_s28 = sld [smem:[#allocation18_spill]] }
 0xa21   : > { %s5753_s29 = sld [smem:[#allocation28_spill]] }
 0xa22   : > { %s5754_s30 = sld [smem:[#allocation20_spill]] }
 0xa23   : > { %s5755_s0 = sld [smem:[#allocation21_spill]] }
 0xa24   : > { %s5756_s19 = sld [smem:[#allocation29_spill]]  ;;  %39 = sbr.rel (!%p37_p12) target bundleno = 32 (0x20), region = 220 }
 0xa25   : > { %s5757_s1 = sld [smem:[#allocation23_spill]] }
 0xa26   : > { %s5758_s20 = sld [smem:[#allocation24_spill]] }
 0xa27   : > { %s5759_s21 = sld [smem:[#allocation26_spill]] }
 0xa28   : > { %s5760_s22 = sld [smem:[#allocation27_spill]] }
 0xa29   :  { %3582 = vsyncpa [#allocation4], 1 }
 0xa2a   :  { %3584 = vsyncpa [#allocation4 + $0x1], 1 }
 0xa2b   :  { %3585 = vsyncpa [#allocation7], 1 }
 0xa2c   :  { %3587 = vsyncpa [#allocation7 + $0x1], 1 }
 0xa2d   :  { %3588 = vsyncpa [#allocation10], 1 }
 0xa2e   :  { %3590 = vsyncpa [#allocation10 + $0x1], 1 }
 0xa2f   :  { %3591 = vsyncpa [#allocation5], 1 }
 0xa30   :  { %3593 = vsyncpa [#allocation5 + $0x1], 1 }

</bundles_post_ra>
